<compile_context>
chip_gen: v5e
topology: v5e:2x2
jax: 0.10.0
libtpu: 0.0.40
codegen_flags: <defaults>
</compile_context>

<pallas_src>
import jax
import jax.numpy as jnp
from jax import lax
from jax.experimental import pallas as pl
from jax.experimental.pallas import tpu as pltpu


def _round_up(n, m):
    return ((n + m - 1) // m) * m


def _pad_to(a, shape):
    pads = [(0, s - d) for d, s in zip(a.shape, shape)]
    return jnp.pad(a, pads)


def lstm_fcn_forward(x, params, chunk_t=None):
    """x: (B, T, D) float32, batch-first like the PyTorch module."""
    B, T, D = x.shape
    H = params["w_hh"].shape[1]
    C = params["wfc"].shape[0]

    Bp = _round_up(max(B, 8), 8)        # sublane-aligned batch
    Hp = _round_up(max(H, 128), 128)    # lane-aligned per-gate width
    Cp = _round_up(max(C, 128), 128)    # lane-dense output

    # Time-chunk size: largest divisor of T whose per-chunk gate scratch
    # (TT * Bp * 4*Hp * 4 bytes) stays well inside VMEM (v7x budget aware).
    if chunk_t is None:
        budget = 8 * 1024 * 1024
        chunk_t = 1
        for cand in range(1, T + 1):
            if T % cand == 0 and cand * Bp * 4 * Hp * 4 <= budget:
                chunk_t = cand
    assert T % chunk_t == 0, "chunk_t must divide T"
    TT = chunk_t
    n_chunks = T // TT

    f32 = jnp.float32
    x = x.astype(f32)

    # Time-major, batch zero-padded input: (T, Bp, D).
    x_tm = _pad_to(jnp.transpose(x, (1, 0, 2)), (T, Bp, D))

    # ---- gate-aligned weight layouts -------------------------------------
    def gate_pad(w):  # (4H, K) -> (K, 4*Hp), each gate block lane-padded
        K = w.shape[1]
        w = w.reshape(4, H, K)
        w = jnp.transpose(w, (2, 0, 1))          # (K, 4, H)
        w = _pad_to(w, (K, 4, Hp))
        return w.reshape(K, 4 * Hp)

    w_ih_t = gate_pad(params["w_ih"]).astype(f32)                    # (D,  4Hp)
    w_hh_t = _pad_to(gate_pad(params["w_hh"]), (Hp, 4 * Hp)).astype(f32)
    bias = (params["b_ih"] + params["b_hh"]).reshape(4, H)
    bias = _pad_to(bias, (4, Hp)).reshape(1, 4 * Hp).astype(f32)     # (1,  4Hp)

    w1_t = _pad_to(params["w1"].T, (D, Hp)).astype(f32)
    b1 = _pad_to(params["b1"].reshape(1, H), (1, Hp)).astype(f32)
    w2_t = _pad_to(params["w2"].T, (Hp, Hp)).astype(f32)
    b2 = _pad_to(params["b2"].reshape(1, H), (1, Hp)).astype(f32)
    w3_t = _pad_to(params["w3"].T, (Hp, Hp)).astype(f32)
    b3 = _pad_to(params["b3"].reshape(1, H), (1, Hp)).astype(f32)
    wfc_t = _pad_to(params["wfc"].T, (Hp, Cp)).astype(f32)
    bfc = _pad_to(params["bfc"].reshape(1, C), (1, Cp)).astype(f32)

    # ---- kernel ----------------------------------------------------------
    def kernel(x_ref, w_ih_ref, w_hh_ref, bias_ref,
               w1_ref, b1_ref, w2_ref, b2_ref, w3_ref, b3_ref,
               wfc_ref, bfc_ref, out_ref,
               gx_ref, h_ref, c_ref, xsum_ref):
        step_idx = pl.program_id(0)

        @pl.when(step_idx == 0)
        def _init():
            h_ref[...] = jnp.zeros_like(h_ref)
            c_ref[...] = jnp.zeros_like(c_ref)
            xsum_ref[...] = jnp.zeros_like(xsum_ref)

        x_chunk = x_ref[...]                              # (TT, Bp, D)

        # FCN branch: 1x1 convs are affine, so mean-over-time commutes; only
        # the running sum of x is needed (accumulated outside the recurrence).
        xsum_ref[...] += jnp.sum(x_chunk, axis=0)         # (Bp, D)

        # Hoisted input projection (+ bias) for the whole chunk: one big
        # MXU matmul instead of TT tiny ones on the serial path.
        gx = jnp.dot(x_chunk.reshape(TT * Bp, D), w_ih_ref[...],
                     preferred_element_type=jnp.float32) + bias_ref[...]
        gx_ref[...] = gx.reshape(TT, Bp, 4 * Hp)

        w_hh = w_hh_ref[...]                              # (Hp, 4Hp)

        def step(t, carry):
            h, c = carry
            gates = gx_ref[t] + jnp.dot(h, w_hh,
                                        preferred_element_type=jnp.float32)
            i = jax.nn.sigmoid(gates[:, 0 * Hp:1 * Hp])   # lane-aligned views
            f = jax.nn.sigmoid(gates[:, 1 * Hp:2 * Hp])
            g = jnp.tanh(gates[:, 2 * Hp:3 * Hp])
            o = jax.nn.sigmoid(gates[:, 3 * Hp:4 * Hp])
            c = f * c + i * g
            h = o * jnp.tanh(c)
            return h, c

        h, c = lax.fori_loop(0, TT, step, (h_ref[...], c_ref[...]),
                             unroll=True if TT <= 16 else 8)
        h_ref[...] = h
        c_ref[...] = c

        @pl.when(step_idx == pl.num_programs(0) - 1)
        def _finalize():
            x_mean = xsum_ref[...] * (1.0 / T)            # (Bp, D)
            y = jnp.dot(x_mean, w1_ref[...],
                        preferred_element_type=jnp.float32) + b1_ref[...]
            y = jnp.dot(y, w2_ref[...],
                        preferred_element_type=jnp.float32) + b2_ref[...]
            y = jnp.dot(y, w3_ref[...],
                        preferred_element_type=jnp.float32) + b3_ref[...]
            combined = h + y                              # (Bp, Hp)
            out = jnp.dot(combined, wfc_ref[...],
                          preferred_element_type=jnp.float32) + bfc_ref[...]
            out_ref[...] = out

    const = lambda t: (0, 0)
    in_specs = [
        pl.BlockSpec((TT, Bp, D), lambda t: (t, 0, 0)),   # x, streamed over T
        pl.BlockSpec((D, 4 * Hp), const),                 # w_ih_t
        pl.BlockSpec((Hp, 4 * Hp), const),                # w_hh_t
        pl.BlockSpec((1, 4 * Hp), const),                 # bias
        pl.BlockSpec((D, Hp), const),                     # w1_t
        pl.BlockSpec((1, Hp), const),                     # b1
        pl.BlockSpec((Hp, Hp), const),                    # w2_t
        pl.BlockSpec((1, Hp), const),                     # b2
        pl.BlockSpec((Hp, Hp), const),                    # w3_t
        pl.BlockSpec((1, Hp), const),                     # b3
        pl.BlockSpec((Hp, Cp), const),                    # wfc_t
        pl.BlockSpec((1, Cp), const),                     # bfc
    ]
    out_spec = pl.BlockSpec((Bp, Cp), const)
    scratch_shapes = [
        pltpu.VMEM((TT, Bp, 4 * Hp), jnp.float32),        # hoisted gate inputs
        pltpu.VMEM((Bp, Hp), jnp.float32),                # h carry
        pltpu.VMEM((Bp, Hp), jnp.float32),                # c carry
        pltpu.VMEM((Bp, D), jnp.float32),                 # sum_t x carry
    ]

    out_padded = pl.pallas_call(
        kernel,
        out_shape=jax.ShapeDtypeStruct((Bp, Cp), jnp.float32),
        grid=(n_chunks,),
        in_specs=in_specs,
        out_specs=out_spec,
        scratch_shapes=scratch_shapes,
        compiler_params=pltpu.CompilerParams(
            dimension_semantics=("arbitrary",)),          # recurrence axis
    )(x_tm, w_ih_t, w_hh_t, bias, w1_t, b1, w2_t, b2, w3_t, b3, wfc_t, bfc)

    return out_padded[:B, :C]


def ref_forward(x, p):
    """Pure-JAX reference mirroring the PyTorch forward exactly."""
    B, T, D = x.shape
    H = p["w_hh"].shape[1]

    def cell(carry, x_t):
        h, c = carry
        gates = x_t @ p["w_ih"].T + p["b_ih"] + h @ p["w_hh"].T + p["b_hh"]
        i, f, g, o = jnp.split(gates, 4, axis=-1)
        i = jax.nn.sigmoid(i); f = jax.nn.sigmoid(f)
        g = jnp.tanh(g); o = jax.nn.sigmoid(o)
        c = f * c + i * g
        h = o * jnp.tanh(c)
        return (h, c), None

    (h, _), _ = lax.scan(cell,
                         (jnp.zeros((B, H), jnp.float32),
                          jnp.zeros((B, H), jnp.float32)),
                         jnp.transpose(x, (1, 0, 2)))

    xc = jnp.transpose(x, (0, 2, 1))                      # (B, D, T) NCW
    y = jnp.einsum('hd,bdt->bht', p["w1"], xc) + p["b1"][None, :, None]
    y = jnp.einsum('hk,bkt->bht', p["w2"], y) + p["b2"][None, :, None]
    y = jnp.einsum('hk,bkt->bht', p["w3"], y) + p["b3"][None, :, None]
    conv = y.mean(axis=2)                                 # (B, H)

    combined = h + conv
    return combined @ p["wfc"].T + p["bfc"]


def init_params(key, input_dim, hidden_dim, num_classes):
    ks = jax.random.split(key, 12)
    k = 1.0 / jnp.sqrt(hidden_dim)
    u = lambda kk, shape: jax.random.uniform(kk, shape, jnp.float32, -k, k)
    return {
        "w_ih": u(ks[0], (4 * hidden_dim, input_dim)),
        "w_hh": u(ks[1], (4 * hidden_dim, hidden_dim)),
        "b_ih": u(ks[2], (4 * hidden_dim,)),
        "b_hh": u(ks[3], (4 * hidden_dim,)),
        "w1":   u(ks[4], (hidden_dim, input_dim)),
        "b1":   u(ks[5], (hidden_dim,)),
        "w2":   u(ks[6], (hidden_dim, hidden_dim)),
        "b2":   u(ks[7], (hidden_dim,)),
        "w3":   u(ks[8], (hidden_dim, hidden_dim)),
        "b3":   u(ks[9], (hidden_dim,)),
        "wfc":  u(ks[10], (num_classes, hidden_dim)),
        "bfc":  u(ks[11], (num_classes,)),
    }


if __name__ == "__main__":
    B, T, D, H, C = 2, 8, 4, 32, 8

    key = jax.random.PRNGKey(0)
    k_x, k_p = jax.random.split(key)
    x = jax.random.normal(k_x, (B, T, D), jnp.float32)
    params = init_params(k_p, D, H, C)

    # chunk_t=4 -> grid of 2 time-chunks, exercising the carried h/c state.
    out = lstm_fcn_forward(x, params, chunk_t=4)
    out = jax.block_until_ready(out)

    ref = ref_forward(x, params)
    assert out.shape == (B, C)
    assert jnp.allclose(out, ref, atol=1e-3, rtol=1e-3), "mismatch vs reference"

    print("KERNEL_OK")
</pallas_src>

<mosaic_0001>
module attributes {stable_mosaic.version = 11 : i64} {
  func.func @kernel(%arg0: i32, %arg1: memref<4x8x4xf32, #tpu.memory_space<vmem>>, %arg2: memref<4x512xf32, #tpu.memory_space<vmem>>, %arg3: memref<128x512xf32, #tpu.memory_space<vmem>>, %arg4: memref<1x512xf32, #tpu.memory_space<vmem>>, %arg5: memref<4x128xf32, #tpu.memory_space<vmem>>, %arg6: memref<1x128xf32, #tpu.memory_space<vmem>>, %arg7: memref<128x128xf32, #tpu.memory_space<vmem>>, %arg8: memref<1x128xf32, #tpu.memory_space<vmem>>, %arg9: memref<128x128xf32, #tpu.memory_space<vmem>>, %arg10: memref<1x128xf32, #tpu.memory_space<vmem>>, %arg11: memref<128x128xf32, #tpu.memory_space<vmem>>, %arg12: memref<1x128xf32, #tpu.memory_space<vmem>>, %arg13: memref<8x128xf32, #tpu.memory_space<vmem>>, %arg14: memref<4x8x512xf32, #tpu.memory_space<vmem>>, %arg15: memref<8x128xf32, #tpu.memory_space<vmem>>, %arg16: memref<8x128xf32, #tpu.memory_space<vmem>>, %arg17: memref<8x4xf32, #tpu.memory_space<vmem>>) attributes {dimension_semantics = [#tpu.dimension_semantics<arbitrary>], iteration_bounds = array<i64: 2>, scalar_prefetch = 0 : i64, scratch_operands = 4 : i64, tpu.core_type = #tpu.core_type<tc>, window_params = [{transform_indices = @transform_0, window_bounds = array<i64: 4, 8, 4>}, {pipeline_mode = #tpu.pipeline_mode<synchronous>, transform_indices = @transform_1, window_bounds = array<i64: 4, 512>}, {pipeline_mode = #tpu.pipeline_mode<synchronous>, transform_indices = @transform_2, window_bounds = array<i64: 128, 512>}, {pipeline_mode = #tpu.pipeline_mode<synchronous>, transform_indices = @transform_3, window_bounds = array<i64: 1, 512>}, {pipeline_mode = #tpu.pipeline_mode<synchronous>, transform_indices = @transform_4, window_bounds = array<i64: 4, 128>}, {pipeline_mode = #tpu.pipeline_mode<synchronous>, transform_indices = @transform_5, window_bounds = array<i64: 1, 128>}, {pipeline_mode = #tpu.pipeline_mode<synchronous>, transform_indices = @transform_6, window_bounds = array<i64: 128, 128>}, {pipeline_mode = #tpu.pipeline_mode<synchronous>, transform_indices = @transform_7, window_bounds = array<i64: 1, 128>}, {pipeline_mode = #tpu.pipeline_mode<synchronous>, transform_indices = @transform_8, window_bounds = array<i64: 128, 128>}, {pipeline_mode = #tpu.pipeline_mode<synchronous>, transform_indices = @transform_9, window_bounds = array<i64: 1, 128>}, {pipeline_mode = #tpu.pipeline_mode<synchronous>, transform_indices = @transform_10, window_bounds = array<i64: 128, 128>}, {pipeline_mode = #tpu.pipeline_mode<synchronous>, transform_indices = @transform_11, window_bounds = array<i64: 1, 128>}, {pipeline_mode = #tpu.pipeline_mode<synchronous>, transform_indices = @transform_12, window_bounds = array<i64: 8, 128>}]} {
    %c0_i32 = arith.constant 0 : i32
    %0 = arith.cmpi eq, %arg0, %c0_i32 : i32
    %1 = arith.extui %0 : i1 to i32
    %c0_i32_0 = arith.constant 0 : i32
    %2 = arith.cmpi ne, %1, %c0_i32_0 : i32
    scf.if %2 {
      %cst_52 = arith.constant 0.000000e+00 : f32
      %144 = vector.broadcast %cst_52 : f32 to vector<8x128xf32>
      %c0_53 = arith.constant 0 : index
      %c0_54 = arith.constant 0 : index
      %145 = vector.load %arg15[%c0_53, %c0_54] : memref<8x128xf32, #tpu.memory_space<vmem>>, vector<8x128xf32>
      tpu.vector_store %arg15[%c0_53, %c0_54], %144 {strides = array<i32>} : memref<8x128xf32, #tpu.memory_space<vmem>>, vector<8x128xf32>,
      %cst_55 = arith.constant 0.000000e+00 : f32
      %146 = vector.broadcast %cst_55 : f32 to vector<8x128xf32>
      %c0_56 = arith.constant 0 : index
      %c0_57 = arith.constant 0 : index
      %147 = vector.load %arg16[%c0_56, %c0_57] : memref<8x128xf32, #tpu.memory_space<vmem>>, vector<8x128xf32>
      tpu.vector_store %arg16[%c0_56, %c0_57], %146 {strides = array<i32>} : memref<8x128xf32, #tpu.memory_space<vmem>>, vector<8x128xf32>,
      %cst_58 = arith.constant 0.000000e+00 : f32
      %148 = vector.broadcast %cst_58 : f32 to vector<8x4xf32>
      %c0_59 = arith.constant 0 : index
      %c0_60 = arith.constant 0 : index
      %149 = vector.load %arg17[%c0_59, %c0_60] : memref<8x4xf32, #tpu.memory_space<vmem>>, vector<8x4xf32>
      tpu.vector_store %arg17[%c0_59, %c0_60], %148 {strides = array<i32>} : memref<8x4xf32, #tpu.memory_space<vmem>>, vector<8x4xf32>,
    } else {
    }
    %c0 = arith.constant 0 : index
    %c0_1 = arith.constant 0 : index
    %c0_2 = arith.constant 0 : index
    %3 = vector.load %arg1[%c0, %c0_1, %c0_2] : memref<4x8x4xf32, #tpu.memory_space<vmem>>, vector<4x8x4xf32>
    %c0_3 = arith.constant 0 : index
    %c0_4 = arith.constant 0 : index
    %4 = vector.load %arg17[%c0_3, %c0_4] : memref<8x4xf32, #tpu.memory_space<vmem>>, vector<8x4xf32>
    %cst = arith.constant dense<0.000000e+00> : vector<8x4xf32>
    %5 = vector.multi_reduction <add>, %3, %cst [0] : vector<4x8x4xf32> to vector<8x4xf32>
    %6 = arith.addf %4, %5 : vector<8x4xf32>
    %c0_5 = arith.constant 0 : index
    %c0_6 = arith.constant 0 : index
    %7 = vector.load %arg17[%c0_5, %c0_6] : memref<8x4xf32, #tpu.memory_space<vmem>>, vector<8x4xf32>
    tpu.vector_store %arg17[%c0_5, %c0_6], %6 {strides = array<i32>} : memref<8x4xf32, #tpu.memory_space<vmem>>, vector<8x4xf32>,
    %8 = vector.shape_cast %3 : vector<4x8x4xf32> to vector<32x4xf32>
    %c0_7 = arith.constant 0 : index
    %c0_8 = arith.constant 0 : index
    %9 = vector.load %arg2[%c0_7, %c0_8] : memref<4x512xf32, #tpu.memory_space<vmem>>, vector<4x512xf32>
    %cst_9 = arith.constant dense<0.000000e+00> : vector<32x512xf32>
    %10 = tpu.matmul %8, %9, %cst_9 {dimension_numbers = #tpu.dot_dimension_numbers<[1], [0], [0], [1], [0, 0, 1, 1], [], []>} : vector<32x4xf32>, vector<4x512xf32>, vector<32x512xf32> -> vector<32x512xf32>
    %c0_10 = arith.constant 0 : index
    %c0_11 = arith.constant 0 : index
    %11 = vector.load %arg4[%c0_10, %c0_11] : memref<1x512xf32, #tpu.memory_space<vmem>>, vector<1x512xf32>
    %12 = vector.broadcast %11 : vector<1x512xf32> to vector<32x512xf32>
    %13 = arith.addf %10, %12 : vector<32x512xf32>
    %14 = vector.shape_cast %13 : vector<32x512xf32> to vector<4x8x512xf32>
    %c0_12 = arith.constant 0 : index
    %c0_13 = arith.constant 0 : index
    %c0_14 = arith.constant 0 : index
    %15 = vector.load %arg14[%c0_12, %c0_13, %c0_14] : memref<4x8x512xf32, #tpu.memory_space<vmem>>, vector<4x8x512xf32>
    tpu.vector_store %arg14[%c0_12, %c0_13, %c0_14], %14 {strides = array<i32>} : memref<4x8x512xf32, #tpu.memory_space<vmem>>, vector<4x8x512xf32>,
    %c0_15 = arith.constant 0 : index
    %c0_16 = arith.constant 0 : index
    %16 = vector.load %arg3[%c0_15, %c0_16] : memref<128x512xf32, #tpu.memory_space<vmem>>, vector<128x512xf32>
    %c0_17 = arith.constant 0 : index
    %c0_18 = arith.constant 0 : index
    %17 = vector.load %arg15[%c0_17, %c0_18] : memref<8x128xf32, #tpu.memory_space<vmem>>, vector<8x128xf32>
    %c0_19 = arith.constant 0 : index
    %c0_20 = arith.constant 0 : index
    %18 = vector.load %arg16[%c0_19, %c0_20] : memref<8x128xf32, #tpu.memory_space<vmem>>, vector<8x128xf32>
    %c0_i32_21 = arith.constant 0 : i32
    %19 = arith.index_cast %c0_i32_21 : i32 to index
    %c0_22 = arith.constant 0 : index
    %c0_23 = arith.constant 0 : index
    %20 = vector.load %arg14[%19, %c0_22, %c0_23] : memref<4x8x512xf32, #tpu.memory_space<vmem>>, vector<1x8x512xf32>
    %21 = vector.shape_cast %20 : vector<1x8x512xf32> to vector<8x512xf32>
    %cst_24 = arith.constant dense<0.000000e+00> : vector<8x512xf32>
    %22 = tpu.matmul %17, %16, %cst_24 {dimension_numbers = #tpu.dot_dimension_numbers<[1], [0], [0], [1], [0, 0, 1, 1], [], []>} : vector<8x128xf32>, vector<128x512xf32>, vector<8x512xf32> -> vector<8x512xf32>
    %23 = arith.addf %21, %22 : vector<8x512xf32>
    %24 = vector.extract_strided_slice %23 {offsets = [0, 0], sizes = [8, 128], strides = [1, 1]} : vector<8x512xf32> to vector<8x128xf32>
    %25 = arith.negf %24 : vector<8x128xf32>
    %26 = math.exp %25 : vector<8x128xf32>
    %cst_25 = arith.constant 1.000000e+00 : f32
    %27 = vector.broadcast %cst_25 : f32 to vector<8x128xf32>
    %28 = arith.addf %27, %26 : vector<8x128xf32>
    %29 = arith.divf %27, %28 : vector<8x128xf32>
    %30 = vector.extract_strided_slice %23 {offsets = [0, 128], sizes = [8, 128], strides = [1, 1]} : vector<8x512xf32> to vector<8x128xf32>
    %31 = arith.negf %30 : vector<8x128xf32>
    %32 = math.exp %31 : vector<8x128xf32>
    %cst_26 = arith.constant 1.000000e+00 : f32
    %33 = vector.broadcast %cst_26 : f32 to vector<8x128xf32>
    %34 = arith.addf %33, %32 : vector<8x128xf32>
    %35 = arith.divf %33, %34 : vector<8x128xf32>
    %36 = vector.extract_strided_slice %23 {offsets = [0, 256], sizes = [8, 128], strides = [1, 1]} : vector<8x512xf32> to vector<8x128xf32>
    %37 = math.tanh %36 : vector<8x128xf32>
    %38 = vector.extract_strided_slice %23 {offsets = [0, 384], sizes = [8, 128], strides = [1, 1]} : vector<8x512xf32> to vector<8x128xf32>
    %39 = arith.negf %38 : vector<8x128xf32>
    %40 = math.exp %39 : vector<8x128xf32>
    %cst_27 = arith.constant 1.000000e+00 : f32
    %41 = vector.broadcast %cst_27 : f32 to vector<8x128xf32>
    %42 = arith.addf %41, %40 : vector<8x128xf32>
    %43 = arith.divf %41, %42 : vector<8x128xf32>
    %44 = arith.mulf %35, %18 : vector<8x128xf32>
    %45 = arith.mulf %29, %37 : vector<8x128xf32>
    %46 = arith.addf %44, %45 : vector<8x128xf32>
    %47 = math.tanh %46 : vector<8x128xf32>
    %48 = arith.mulf %43, %47 : vector<8x128xf32>
    %c1_i32 = arith.constant 1 : i32
    %49 = arith.index_cast %c1_i32 : i32 to index
    %c0_28 = arith.constant 0 : index
    %c0_29 = arith.constant 0 : index
    %50 = vector.load %arg14[%49, %c0_28, %c0_29] : memref<4x8x512xf32, #tpu.memory_space<vmem>>, vector<1x8x512xf32>
    %51 = vector.shape_cast %50 : vector<1x8x512xf32> to vector<8x512xf32>
    %cst_30 = arith.constant dense<0.000000e+00> : vector<8x512xf32>
    %52 = tpu.matmul %48, %16, %cst_30 {dimension_numbers = #tpu.dot_dimension_numbers<[1], [0], [0], [1], [0, 0, 1, 1], [], []>} : vector<8x128xf32>, vector<128x512xf32>, vector<8x512xf32> -> vector<8x512xf32>
    %53 = arith.addf %51, %52 : vector<8x512xf32>
    %54 = vector.extract_strided_slice %53 {offsets = [0, 0], sizes = [8, 128], strides = [1, 1]} : vector<8x512xf32> to vector<8x128xf32>
    %55 = arith.negf %54 : vector<8x128xf32>
    %56 = math.exp %55 : vector<8x128xf32>
    %cst_31 = arith.constant 1.000000e+00 : f32
    %57 = vector.broadcast %cst_31 : f32 to vector<8x128xf32>
    %58 = arith.addf %57, %56 : vector<8x128xf32>
    %59 = arith.divf %57, %58 : vector<8x128xf32>
    %60 = vector.extract_strided_slice %53 {offsets = [0, 128], sizes = [8, 128], strides = [1, 1]} : vector<8x512xf32> to vector<8x128xf32>
    %61 = arith.negf %60 : vector<8x128xf32>
    %62 = math.exp %61 : vector<8x128xf32>
    %cst_32 = arith.constant 1.000000e+00 : f32
    %63 = vector.broadcast %cst_32 : f32 to vector<8x128xf32>
    %64 = arith.addf %63, %62 : vector<8x128xf32>
    %65 = arith.divf %63, %64 : vector<8x128xf32>
    %66 = vector.extract_strided_slice %53 {offsets = [0, 256], sizes = [8, 128], strides = [1, 1]} : vector<8x512xf32> to vector<8x128xf32>
    %67 = math.tanh %66 : vector<8x128xf32>
    %68 = vector.extract_strided_slice %53 {offsets = [0, 384], sizes = [8, 128], strides = [1, 1]} : vector<8x512xf32> to vector<8x128xf32>
    %69 = arith.negf %68 : vector<8x128xf32>
    %70 = math.exp %69 : vector<8x128xf32>
    %cst_33 = arith.constant 1.000000e+00 : f32
    %71 = vector.broadcast %cst_33 : f32 to vector<8x128xf32>
    %72 = arith.addf %71, %70 : vector<8x128xf32>
    %73 = arith.divf %71, %72 : vector<8x128xf32>
    %74 = arith.mulf %65, %46 : vector<8x128xf32>
    %75 = arith.mulf %59, %67 : vector<8x128xf32>
    %76 = arith.addf %74, %75 : vector<8x128xf32>
    %77 = math.tanh %76 : vector<8x128xf32>
    %78 = arith.mulf %73, %77 : vector<8x128xf32>
    %c2_i32 = arith.constant 2 : i32
    %79 = arith.index_cast %c2_i32 : i32 to index
    %c0_34 = arith.constant 0 : index
    %c0_35 = arith.constant 0 : index
    %80 = vector.load %arg14[%79, %c0_34, %c0_35] : memref<4x8x512xf32, #tpu.memory_space<vmem>>, vector<1x8x512xf32>
    %81 = vector.shape_cast %80 : vector<1x8x512xf32> to vector<8x512xf32>
    %cst_36 = arith.constant dense<0.000000e+00> : vector<8x512xf32>
    %82 = tpu.matmul %78, %16, %cst_36 {dimension_numbers = #tpu.dot_dimension_numbers<[1], [0], [0], [1], [0, 0, 1, 1], [], []>} : vector<8x128xf32>, vector<128x512xf32>, vector<8x512xf32> -> vector<8x512xf32>
    %83 = arith.addf %81, %82 : vector<8x512xf32>
    %84 = vector.extract_strided_slice %83 {offsets = [0, 0], sizes = [8, 128], strides = [1, 1]} : vector<8x512xf32> to vector<8x128xf32>
    %85 = arith.negf %84 : vector<8x128xf32>
    %86 = math.exp %85 : vector<8x128xf32>
    %cst_37 = arith.constant 1.000000e+00 : f32
    %87 = vector.broadcast %cst_37 : f32 to vector<8x128xf32>
    %88 = arith.addf %87, %86 : vector<8x128xf32>
    %89 = arith.divf %87, %88 : vector<8x128xf32>
    %90 = vector.extract_strided_slice %83 {offsets = [0, 128], sizes = [8, 128], strides = [1, 1]} : vector<8x512xf32> to vector<8x128xf32>
    %91 = arith.negf %90 : vector<8x128xf32>
    %92 = math.exp %91 : vector<8x128xf32>
    %cst_38 = arith.constant 1.000000e+00 : f32
    %93 = vector.broadcast %cst_38 : f32 to vector<8x128xf32>
    %94 = arith.addf %93, %92 : vector<8x128xf32>
    %95 = arith.divf %93, %94 : vector<8x128xf32>
    %96 = vector.extract_strided_slice %83 {offsets = [0, 256], sizes = [8, 128], strides = [1, 1]} : vector<8x512xf32> to vector<8x128xf32>
    %97 = math.tanh %96 : vector<8x128xf32>
    %98 = vector.extract_strided_slice %83 {offsets = [0, 384], sizes = [8, 128], strides = [1, 1]} : vector<8x512xf32> to vector<8x128xf32>
    %99 = arith.negf %98 : vector<8x128xf32>
    %100 = math.exp %99 : vector<8x128xf32>
    %cst_39 = arith.constant 1.000000e+00 : f32
    %101 = vector.broadcast %cst_39 : f32 to vector<8x128xf32>
    %102 = arith.addf %101, %100 : vector<8x128xf32>
    %103 = arith.divf %101, %102 : vector<8x128xf32>
    %104 = arith.mulf %95, %76 : vector<8x128xf32>
    %105 = arith.mulf %89, %97 : vector<8x128xf32>
    %106 = arith.addf %104, %105 : vector<8x128xf32>
    %107 = math.tanh %106 : vector<8x128xf32>
    %108 = arith.mulf %103, %107 : vector<8x128xf32>
    %c3_i32 = arith.constant 3 : i32
    %109 = arith.index_cast %c3_i32 : i32 to index
    %c0_40 = arith.constant 0 : index
    %c0_41 = arith.constant 0 : index
    %110 = vector.load %arg14[%109, %c0_40, %c0_41] : memref<4x8x512xf32, #tpu.memory_space<vmem>>, vector<1x8x512xf32>
    %111 = vector.shape_cast %110 : vector<1x8x512xf32> to vector<8x512xf32>
    %cst_42 = arith.constant dense<0.000000e+00> : vector<8x512xf32>
    %112 = tpu.matmul %108, %16, %cst_42 {dimension_numbers = #tpu.dot_dimension_numbers<[1], [0], [0], [1], [0, 0, 1, 1], [], []>} : vector<8x128xf32>, vector<128x512xf32>, vector<8x512xf32> -> vector<8x512xf32>
    %113 = arith.addf %111, %112 : vector<8x512xf32>
    %114 = vector.extract_strided_slice %113 {offsets = [0, 0], sizes = [8, 128], strides = [1, 1]} : vector<8x512xf32> to vector<8x128xf32>
    %115 = arith.negf %114 : vector<8x128xf32>
    %116 = math.exp %115 : vector<8x128xf32>
    %cst_43 = arith.constant 1.000000e+00 : f32
    %117 = vector.broadcast %cst_43 : f32 to vector<8x128xf32>
    %118 = arith.addf %117, %116 : vector<8x128xf32>
    %119 = arith.divf %117, %118 : vector<8x128xf32>
    %120 = vector.extract_strided_slice %113 {offsets = [0, 128], sizes = [8, 128], strides = [1, 1]} : vector<8x512xf32> to vector<8x128xf32>
    %121 = arith.negf %120 : vector<8x128xf32>
    %122 = math.exp %121 : vector<8x128xf32>
    %cst_44 = arith.constant 1.000000e+00 : f32
    %123 = vector.broadcast %cst_44 : f32 to vector<8x128xf32>
    %124 = arith.addf %123, %122 : vector<8x128xf32>
    %125 = arith.divf %123, %124 : vector<8x128xf32>
    %126 = vector.extract_strided_slice %113 {offsets = [0, 256], sizes = [8, 128], strides = [1, 1]} : vector<8x512xf32> to vector<8x128xf32>
    %127 = math.tanh %126 : vector<8x128xf32>
    %128 = vector.extract_strided_slice %113 {offsets = [0, 384], sizes = [8, 128], strides = [1, 1]} : vector<8x512xf32> to vector<8x128xf32>
    %129 = arith.negf %128 : vector<8x128xf32>
    %130 = math.exp %129 : vector<8x128xf32>
    %cst_45 = arith.constant 1.000000e+00 : f32
    %131 = vector.broadcast %cst_45 : f32 to vector<8x128xf32>
    %132 = arith.addf %131, %130 : vector<8x128xf32>
    %133 = arith.divf %131, %132 : vector<8x128xf32>
    %134 = arith.mulf %125, %106 : vector<8x128xf32>
    %135 = arith.mulf %119, %127 : vector<8x128xf32>
    %136 = arith.addf %134, %135 : vector<8x128xf32>
    %137 = math.tanh %136 : vector<8x128xf32>
    %138 = arith.mulf %133, %137 : vector<8x128xf32>
    %c4_i32 = arith.constant 4 : i32
    %c0_46 = arith.constant 0 : index
    %c0_47 = arith.constant 0 : index
    %139 = vector.load %arg15[%c0_46, %c0_47] : memref<8x128xf32, #tpu.memory_space<vmem>>, vector<8x128xf32>
    tpu.vector_store %arg15[%c0_46, %c0_47], %138 {strides = array<i32>} : memref<8x128xf32, #tpu.memory_space<vmem>>, vector<8x128xf32>,
    %c0_48 = arith.constant 0 : index
    %c0_49 = arith.constant 0 : index
    %140 = vector.load %arg16[%c0_48, %c0_49] : memref<8x128xf32, #tpu.memory_space<vmem>>, vector<8x128xf32>
    tpu.vector_store %arg16[%c0_48, %c0_49], %136 {strides = array<i32>} : memref<8x128xf32, #tpu.memory_space<vmem>>, vector<8x128xf32>,
    %c1_i32_50 = arith.constant 1 : i32
    %141 = arith.cmpi eq, %arg0, %c1_i32_50 : i32
    %142 = arith.extui %141 : i1 to i32
    %c0_i32_51 = arith.constant 0 : i32
    %143 = arith.cmpi ne, %142, %c0_i32_51 : i32
    scf.if %143 {
      %c0_52 = arith.constant 0 : index
      %c0_53 = arith.constant 0 : index
      %144 = vector.load %arg17[%c0_52, %c0_53] : memref<8x4xf32, #tpu.memory_space<vmem>>, vector<8x4xf32>
      %cst_54 = arith.constant 1.250000e-01 : f32
      %145 = vector.broadcast %cst_54 : f32 to vector<8x4xf32>
      %146 = arith.mulf %144, %145 : vector<8x4xf32>
      %c0_55 = arith.constant 0 : index
      %c0_56 = arith.constant 0 : index
      %147 = vector.load %arg5[%c0_55, %c0_56] : memref<4x128xf32, #tpu.memory_space<vmem>>, vector<4x128xf32>
      %cst_57 = arith.constant dense<0.000000e+00> : vector<8x128xf32>
      %148 = tpu.matmul %146, %147, %cst_57 {dimension_numbers = #tpu.dot_dimension_numbers<[1], [0], [0], [1], [0, 0, 1, 1], [], []>} : vector<8x4xf32>, vector<4x128xf32>, vector<8x128xf32> -> vector<8x128xf32>
      %c0_58 = arith.constant 0 : index
      %c0_59 = arith.constant 0 : index
      %149 = vector.load %arg6[%c0_58, %c0_59] : memref<1x128xf32, #tpu.memory_space<vmem>>, vector<1x128xf32>
      %150 = vector.broadcast %149 : vector<1x128xf32> to vector<8x128xf32>
      %151 = arith.addf %148, %150 : vector<8x128xf32>
      %c0_60 = arith.constant 0 : index
      %c0_61 = arith.constant 0 : index
      %152 = vector.load %arg7[%c0_60, %c0_61] : memref<128x128xf32, #tpu.memory_space<vmem>>, vector<128x128xf32>
      %cst_62 = arith.constant dense<0.000000e+00> : vector<8x128xf32>
      %153 = tpu.matmul %151, %152, %cst_62 {dimension_numbers = #tpu.dot_dimension_numbers<[1], [0], [0], [1], [0, 0, 1, 1], [], []>} : vector<8x128xf32>, vector<128x128xf32>, vector<8x128xf32> -> vector<8x128xf32>
      %c0_63 = arith.constant 0 : index
      %c0_64 = arith.constant 0 : index
      %154 = vector.load %arg8[%c0_63, %c0_64] : memref<1x128xf32, #tpu.memory_space<vmem>>, vector<1x128xf32>
      %155 = vector.broadcast %154 : vector<1x128xf32> to vector<8x128xf32>
      %156 = arith.addf %153, %155 : vector<8x128xf32>
      %c0_65 = arith.constant 0 : index
      %c0_66 = arith.constant 0 : index
      %157 = vector.load %arg9[%c0_65, %c0_66] : memref<128x128xf32, #tpu.memory_space<vmem>>, vector<128x128xf32>
      %cst_67 = arith.constant dense<0.000000e+00> : vector<8x128xf32>
      %158 = tpu.matmul %156, %157, %cst_67 {dimension_numbers = #tpu.dot_dimension_numbers<[1], [0], [0], [1], [0, 0, 1, 1], [], []>} : vector<8x128xf32>, vector<128x128xf32>, vector<8x128xf32> -> vector<8x128xf32>
      %c0_68 = arith.constant 0 : index
      %c0_69 = arith.constant 0 : index
      %159 = vector.load %arg10[%c0_68, %c0_69] : memref<1x128xf32, #tpu.memory_space<vmem>>, vector<1x128xf32>
      %160 = vector.broadcast %159 : vector<1x128xf32> to vector<8x128xf32>
      %161 = arith.addf %158, %160 : vector<8x128xf32>
      %162 = arith.addf %138, %161 : vector<8x128xf32>
      %c0_70 = arith.constant 0 : index
      %c0_71 = arith.constant 0 : index
      %163 = vector.load %arg11[%c0_70, %c0_71] : memref<128x128xf32, #tpu.memory_space<vmem>>, vector<128x128xf32>
      %cst_72 = arith.constant dense<0.000000e+00> : vector<8x128xf32>
      %164 = tpu.matmul %162, %163, %cst_72 {dimension_numbers = #tpu.dot_dimension_numbers<[1], [0], [0], [1], [0, 0, 1, 1], [], []>} : vector<8x128xf32>, vector<128x128xf32>, vector<8x128xf32> -> vector<8x128xf32>
      %c0_73 = arith.constant 0 : index
      %c0_74 = arith.constant 0 : index
      %165 = vector.load %arg12[%c0_73, %c0_74] : memref<1x128xf32, #tpu.memory_space<vmem>>, vector<1x128xf32>
      %166 = vector.broadcast %165 : vector<1x128xf32> to vector<8x128xf32>
      %167 = arith.addf %164, %166 : vector<8x128xf32>
      %c0_75 = arith.constant 0 : index
      %c0_76 = arith.constant 0 : index
      %168 = vector.load %arg13[%c0_75, %c0_76] : memref<8x128xf32, #tpu.memory_space<vmem>>, vector<8x128xf32>
      tpu.vector_store %arg13[%c0_75, %c0_76], %167 {strides = array<i32>} : memref<8x128xf32, #tpu.memory_space<vmem>>, vector<8x128xf32>,
    } else {
    }
    return
  }
  func.func @transform_0(%arg0: i32) -> (i32, i32, i32) {
    %c0_i32 = arith.constant 0 : i32
    %c0_i32_0 = arith.constant 0 : i32
    %c0_i32_1 = arith.constant 0 : i32
    return %arg0, %c0_i32, %c0_i32_0 : i32, i32, i32
  }
  func.func @transform_1(%arg0: i32) -> (i32, i32) {
    %c0_i32 = arith.constant 0 : i32
    %c0_i32_0 = arith.constant 0 : i32
    %c0_i32_1 = arith.constant 0 : i32
    return %c0_i32, %c0_i32_0 : i32, i32
  }
  func.func @transform_2(%arg0: i32) -> (i32, i32) {
    %c0_i32 = arith.constant 0 : i32
    %c0_i32_0 = arith.constant 0 : i32
    %c0_i32_1 = arith.constant 0 : i32
    return %c0_i32, %c0_i32_0 : i32, i32
  }
  func.func @transform_3(%arg0: i32) -> (i32, i32) {
    %c0_i32 = arith.constant 0 : i32
    %c0_i32_0 = arith.constant 0 : i32
    %c0_i32_1 = arith.constant 0 : i32
    return %c0_i32, %c0_i32_0 : i32, i32
  }
  func.func @transform_4(%arg0: i32) -> (i32, i32) {
    %c0_i32 = arith.constant 0 : i32
    %c0_i32_0 = arith.constant 0 : i32
    %c0_i32_1 = arith.constant 0 : i32
    return %c0_i32, %c0_i32_0 : i32, i32
  }
  func.func @transform_5(%arg0: i32) -> (i32, i32) {
    %c0_i32 = arith.constant 0 : i32
    %c0_i32_0 = arith.constant 0 : i32
    %c0_i32_1 = arith.constant 0 : i32
    return %c0_i32, %c0_i32_0 : i32, i32
  }
  func.func @transform_6(%arg0: i32) -> (i32, i32) {
    %c0_i32 = arith.constant 0 : i32
    %c0_i32_0 = arith.constant 0 : i32
    %c0_i32_1 = arith.constant 0 : i32
    return %c0_i32, %c0_i32_0 : i32, i32
  }
  func.func @transform_7(%arg0: i32) -> (i32, i32) {
    %c0_i32 = arith.constant 0 : i32
    %c0_i32_0 = arith.constant 0 : i32
    %c0_i32_1 = arith.constant 0 : i32
    return %c0_i32, %c0_i32_0 : i32, i32
  }
  func.func @transform_8(%arg0: i32) -> (i32, i32) {
    %c0_i32 = arith.constant 0 : i32
    %c0_i32_0 = arith.constant 0 : i32
    %c0_i32_1 = arith.constant 0 : i32
    return %c0_i32, %c0_i32_0 : i32, i32
  }
  func.func @transform_9(%arg0: i32) -> (i32, i32) {
    %c0_i32 = arith.constant 0 : i32
    %c0_i32_0 = arith.constant 0 : i32
    %c0_i32_1 = arith.constant 0 : i32
    return %c0_i32, %c0_i32_0 : i32, i32
  }
  func.func @transform_10(%arg0: i32) -> (i32, i32) {
    %c0_i32 = arith.constant 0 : i32
    %c0_i32_0 = arith.constant 0 : i32
    %c0_i32_1 = arith.constant 0 : i32
    return %c0_i32, %c0_i32_0 : i32, i32
  }
  func.func @transform_11(%arg0: i32) -> (i32, i32) {
    %c0_i32 = arith.constant 0 : i32
    %c0_i32_0 = arith.constant 0 : i32
    %c0_i32_1 = arith.constant 0 : i32
    return %c0_i32, %c0_i32_0 : i32, i32
  }
  func.func @transform_12(%arg0: i32) -> (i32, i32) {
    %c0_i32 = arith.constant 0 : i32
    %c0_i32_0 = arith.constant 0 : i32
    %c0_i32_1 = arith.constant 0 : i32
    return %c0_i32, %c0_i32_0 : i32, i32
  }
}

</mosaic_0001>

<bundles_post_ra>
// kernel: tpu_custom_call.1
= control target key start
LH: loop header
LB: loop body
LE: loop exit
PB: predicated region body
PF: predicated region fallthrough
CT: control target
= control target key end

     0   :  { %s2598_s0 = inlined_call_operand.vmem [shape: f32[8,8,4], index: 0, kind: input, shape index: {}]   ;;  %s2599_s1 = inlined_call_operand.vmem [shape: f32[4,512], index: 1, kind: input, shape index: {}]   ;;  %s2600_s2 = inlined_call_operand.hbm [shape: f32[128,512], index: 2, kind: input, shape index: {}]   ;;  %s2601_s3 = inlined_call_operand.vmem [shape: f32[1,512], index: 3, kind: input, shape index: {}]   ;;  %s2602_s4 = inlined_call_operand.vmem [shape: f32[4,128], index: 4, kind: input, shape index: {}]   ;;  %s2603_s5 = inlined_call_operand.vmem [shape: f32[1,128], index: 5, kind: input, shape index: {}]   ;;  %s2604_s6 = inlined_call_operand.hbm [shape: f32[128,128], index: 6, kind: input, shape index: {}]   ;;  %s2605_s7 = inlined_call_operand.vmem [shape: f32[1,128], index: 7, kind: input, shape index: {}]   ;;  %s2606_s8 = inlined_call_operand.hbm [shape: f32[128,128], index: 8, kind: input, shape index: {}]   ;;  %s2607_s9 = inlined_call_operand.vmem [shape: f32[1,128], index: 9, kind: input, shape index: {}]   ;;  %s2608_s10 = inlined_call_operand.hbm [shape: f32[128,128], index: 10, kind: input, shape index: {}]   ;;  %s2609_s11 = inlined_call_operand.vmem [shape: f32[1,128], index: 11, kind: input, shape index: {}]   ;;  %s2610_s12 = inlined_call_operand.hbm [shape: f32[8,128], index: 12, kind: output, shape index: {}]  }
   0x1   :  { %2639 = sst [smem:[#allocation57_spill]] %s2600_s2 }
   0x2   :  { %2640 = sst [smem:[#allocation58_spill]] %s2604_s6 }
   0x3   :  { %17 = vsyncpa [#allocation7], 0 }
   0x4   :  { %18 = vsyncpa [#allocation10], 0 }
   0x5   :  { %19 = vsyncpa [#allocation13], 0 }
   0x6   :  { %20 = vsyncpa [#allocation8], 0  ;;  %s2019_s21 = smov 0  }
   0x7 LB: > { %s2641_s6 = sld [smem:[#allocation58_spill]]  ;;  %s2028_s25 = sadd.s32 4294967295, %s1942_s21   ;;  %s1942_s21 = sphi %s2019_s21, %s26_s21  }
   0x8   : > { %p1590_p0 = scmp.ge.s32.totalorder %s1942_s21, 1  ;;  %p309_p1 = scmp.lt.s32.totalorder %s1942_s21, 3 }
   0x9   : > { %p1591_p2 = scmp.ne.s32.totalorder %s2028_s25, 0  ;;  %p1676_p3 = scmp.eq.s32.totalorder %s2028_s25, 0 }
   0xa   : > { %p2034_p4 = pnand %p1590_p0, %p309_p1  ;;  %s1944_s27 = smov [#allocation9]  }
   0xb   : > { %s348_s28 = sshll.u32 %s1944_s27, 4  ;;  %s2643_s2 = sld [smem:[#allocation57_spill]]  ;;  %s349_s28 = int_to_ptr.vmem [resolvable:$true] %s348_s28 }
   0xc   : > { %p1663_p5 = pneg %p2034_p4  ;;  %s1945_s15 = smov [#allocation6]  }
   0xd   : > { %s346_s24 = sshll.u32 %s2641_s6, 4  ;;  %s325_s16 = sshll.u32 %s1945_s15, 4  ;;  %s347_s24 = int_to_ptr.hbm [resolvable:$true] %s346_s24  ;;  %s326_s16 = int_to_ptr.vmem [resolvable:$true] %s325_s16 }
   0xe   : > { %p2045_p6 = pnand %p1676_p3, %p1663_p5  ;;  %s1946_s17 = smov 128  }
   0xf   : > { %s1947_s18 = smov 8   ;;  %s363_s22 = sshll.u32 %s2606_s8, 4  ;;  %s364_s22 = int_to_ptr.hbm [resolvable:$true] %s363_s22 }
  0x10   : > { %1669 = dma.hbm_to_vmem [thread:$0]  (!%p2045_p6), %s347_s24, 2048, %s349_s28, [#allocation10], %s1946_s17, %s1946_s17, %s1947_s18  }
  0x11   : > { %s323_s13 = sshll.u32 %s2643_s2, 4  ;;  %s1948_s23 = smov 512   ;;  %s324_s13 = int_to_ptr.hbm [resolvable:$true] %s323_s13 }
  0x12   : > { %s1949_s27 = smov 32   ;;  %s1950_s29 = smov [#allocation11]  }
  0x13   : > { %1666 = dma.hbm_to_vmem [thread:$0]  (!%p2045_p6), %s324_s13, 8192, %s326_s16, [#allocation7], %s1948_s23, %s1948_s23, %s1949_s27  }
  0x14   : > { %s365_s30 = sshll.u32 %s1950_s29, 4  ;;  %s380_s15 = sshll.u32 %s2608_s10, 4  ;;  %s366_s30 = int_to_ptr.vmem [resolvable:$true] %s365_s30  ;;  %s381_s15 = int_to_ptr.hbm [resolvable:$true] %s380_s15 }
  0x15   : > { %1672 = dma.hbm_to_vmem [thread:$0]  (!%p2045_p6), %s364_s22, 2048, %s366_s30, [#allocation10], %s1946_s17, %s1946_s17, %s1947_s18  }
  0x16   : > { %s1951_s24 = smov [#allocation12]   ;;  %410 = sbr.rel (%p2034_p4) target bundleno = 1309 (0x51d), region = 68 }
  0x17   : > { %s382_s28 = sshll.u32 %s1951_s24, 4  ;;  %s383_s28 = int_to_ptr.vmem [resolvable:$true] %s382_s28 }
  0x18   : > { %1675 = dma.hbm_to_vmem [thread:$0]  (!%p2045_p6), %s381_s15, 2048, %s383_s28, [#allocation13], %s1946_s17, %s1946_s17, %s1947_s18  }
  0x1b   : > { %1925 = dma.done.wait (%p1676_p3), [#allocation7], 8192  }
  0x1c   : > { %1927 = vsyncadd (%p1676_p3), [#allocation7], 4294959104 }
  0x1d   : > { %1929 = dma.done.wait (%p1676_p3), [#allocation10], 4096  }
  0x1e   : > { %1931 = vsyncadd (%p1676_p3), [#allocation10], 4294963200 }
  0x1f   : > { %1933 = dma.done.wait (%p1676_p3), [#allocation13], 2048  }
  0x20   : > { %1935 = vsyncadd (%p1676_p3), [#allocation13], 4294965248  ;;  %s1601_s2 = sshll.u32 %s2028_s25, 2 }
  0x21   : > { %p464_p7 = scmp.lt.s32.totalorder %s1601_s2, 7  ;;  %472 = sbr.rel (%p1591_p2) target bundleno = 42 (0x2a), region = 88 }
  0x23   : > { %s2723_s2 = smov (!%p464_p7, %s1601_s2), 7 }
  0x24   : > { %s1602_s6 = sshll.u32 %s2723_s2, 3 }
  0x25   : > { %s2081_s14 = scalar_lea.vmem %s2598_s0, %s1602_s6 }
  0x26   : > { %vm475_vm0 = vcmask 31744   ;;  %v1952_v0 = vmov 0.0  }
  0x27   : > { %473 = vst [vmem:[#allocation3] sm:$0xff] %v1952_v0 }
  0x28   : > { %474 = vst [vmem:[#allocation4] sm:$0xff] %v1952_v0 }
  0x29   : > { %476 = vst.msk [vmem:[#allocation5] sm:$0xff] %vm475_vm0, %v1952_v0 }
  0x2a PF: > { %v492_v1 = vld [vmem:[%s2599_s1] sm:$0xff]  ;;  %v493_v2 = vld [vmem:[%s2599_s1 + $0x8] sm:$0xff]  ;;  %vm525_vm1 = vcmask 1043456   ;;  %vm482_vm2 = vcmask 31744   ;;  %v2105_v13 = vld [vmem:[#allocation6 + $0x1f0] sm:$0xff]  ;;  %p1636_p8 = scmp.ne.s32.totalorder %s2028_s25, 1 }
  0x2b   : > { %506 = vst [vmem:[#allocation1] ss:$2 sm:$0xff] %v492_v1  ;;  %v477_v3 = vld [vmem:[%s2081_s14] sm:$0xff]  ;;  %v478_v4 = vld [vmem:[%s2081_s14 + $0x8] sm:$0xff]  ;;  %v2107_v14 = vld [vmem:[#allocation6 + $0x1f8] sm:$0xff] }
  0x2c   : > { %508 = vst [vmem:[#allocation1 + $0x10] ss:$2 sm:$0xff] %v493_v2  ;;  %v483_v9 = vsel %vm482_vm2, %v477_v3, 0.0  ;;  %v2098_v10 = vld [vmem:[#allocation6 + $0x1e0] sm:$0xff]  ;;  %v2100_v11 = vld [vmem:[#allocation6 + $0x1e8] sm:$0xff]  ;;  %v484_v12 = vsel %vm482_vm2, %v478_v4, 0.0 }
  0x2d   : > { %v2111_v15 = vld [vmem:[#allocation6 + $0x1c0] sm:$0xff]  ;;  %v2113_v16 = vld [vmem:[#allocation6 + $0x1c8] sm:$0xff]  ;;  %v2117_v17 = vld [vmem:[#allocation6 + $0x1d0] sm:$0xff]  ;;  %v485_v19 = vadd.f32 %v484_v12, %v483_v9 }
  0x2e   : > { %v2119_v18 = vld [vmem:[#allocation6 + $0x1d8] sm:$0xff]  ;;  %v2123_v20 = vld [vmem:[#allocation6 + $0x1a0] sm:$0xff]  ;;  %v2125_v21 = vld [vmem:[#allocation6 + $0x1a8] sm:$0xff] }
  0x2f   : > { %v2128_v22 = vld [vmem:[%s2081_s14 + $0x10] sm:$0xff]  ;;  %v2134_v24 = vld [vmem:[#allocation6 + $0x1b8] sm:$0xff]  ;;  %v2140_v26 = vld [vmem:[#allocation6 + $0x180] sm:$0xff] }
  0x30   : > { %v2132_v23 = vld [vmem:[#allocation6 + $0x1b0] sm:$0xff]  ;;  %v486_v25 = vsel %vm482_vm2, %v2128_v22, 0.0  ;;  %v2142_v27 = vld [vmem:[#allocation6 + $0x188] sm:$0xff]  ;;  %v2148_v29 = vld [vmem:[#allocation6 + $0x198] sm:$0xff] }
  0x31   : > { %v2146_v28 = vld [vmem:[#allocation6 + $0x190] sm:$0xff]  ;;  %v487_v30 = vadd.f32 %v486_v25, %v485_v19  ;;  %v2155_v31 = vld [vmem:[%s2081_s14 + $0x18] sm:$0xff]  ;;  %v2159_v32 = vld [vmem:[#allocation6 + $0x160] sm:$0xff] }
  0x32   : > { %v509_v5 = vld.sshfl [vmem:[#allocation1] sm:$0xff pattern:$0x75316420]  ;;  %v510_v6 = vld.sshfl [vmem:[#allocation1 + $0x8] sm:$0xff pattern:$0x75316420] }
  0x33   : > { %1604 = vmatpush.msk.msra.mxu0 %vm525_vm1, %v509_v5  ;;  %1609 = vmatpush.msk.msra.mxu1 %vm525_vm1, %v510_v6  ;;  %v511_v7 = vld.sshfl [vmem:[#allocation1 + $0x10] sm:$0xff pattern:$0x75316420]  ;;  %v512_v8 = vld.sshfl [vmem:[#allocation1 + $0x18] sm:$0xff pattern:$0x75316420] }
  0x34   : > { %1614 = vmatpush.msk.msra.mxu2 %vm525_vm1, %v511_v7  ;;  %1619 = vmatpush.msk.msra.mxu3 %vm525_vm1, %v512_v8  ;;  %v2161_v33 = vld [vmem:[#allocation6 + $0x168] sm:$0xff]  ;;  %v481_v34 = vld [vmem:[#allocation5] sm:$0xff]  ;;  %v488_v35 = vsel %vm482_vm2, %v2155_v31, 0.0  ;;  %v2167_v36 = vld [vmem:[#allocation6 + $0x170] sm:$0xff] }
  0x35   : > { %1605 = vmatmul.msk.f32.vlgmr.msra.gmra.mxu0 %vm482_vm2, %v477_v3  ;;  %1610 = vmatmul.msk.f32.vlgmr.msra.gmra.mxu1 %vm482_vm2, %v477_v3  ;;  %v2169_v37 = vld [vmem:[#allocation6 + $0x178] sm:$0xff]  ;;  %v489_v38 = vadd.f32 %v488_v35, %v487_v30  ;;  %v2173_v39 = vld [vmem:[#allocation6 + $0x140] sm:$0xff]  ;;  %v2175_v40 = vld [vmem:[#allocation6 + $0x148] sm:$0xff] }
  0x36   : > { %1615 = vmatmul.msk.f32.vlgmr.msra.gmra.mxu2 %vm482_vm2, %v477_v3  ;;  %1620 = vmatmul.msk.f32.vlgmr.msra.gmra.mxu3 %vm482_vm2, %v477_v3  ;;  %v2179_v41 = vld [vmem:[#allocation6 + $0x150] sm:$0xff]  ;;  %v2181_v42 = vld [vmem:[#allocation6 + $0x158] sm:$0xff]  ;;  %v2185_v44 = vld [vmem:[#allocation6 + $0x120] sm:$0xff] }
  0x37   : > { %736 = vmatpush.msrb.mxu0 %v2098_v10  ;;  %756 = vmatpush.msrb.mxu1 %v2100_v11  ;;  %v490_v43 = vadd.f32 %v489_v38, %v481_v34  ;;  %v2187_v45 = vld [vmem:[#allocation6 + $0x128] sm:$0xff]  ;;  %v2191_v46 = vld [vmem:[#allocation6 + $0x130] sm:$0xff]  ;;  %v2193_v47 = vld [vmem:[#allocation6 + $0x138] sm:$0xff] }
  0x38   : > { %776 = vmatpush.msrb.mxu2 %v2105_v13  ;;  %796 = vmatpush.msrb.mxu3 %v2107_v14  ;;  %v2198_v48 = vld [vmem:[#allocation6 + $0x100] sm:$0xff]  ;;  %v2200_v49 = vld [vmem:[#allocation6 + $0x108] sm:$0xff]  ;;  %v2204_v50 = vld [vmem:[#allocation6 + $0x110] sm:$0xff] }
  0x39   : > { %737 = vmatpush.msrb.mxu0 %v2111_v15  ;;  %757 = vmatpush.msrb.mxu1 %v2113_v16  ;;  %491 = vst.msk [vmem:[#allocation5] sm:$0xff] %vm482_vm2, %v490_v43  ;;  %v2206_v51 = vld [vmem:[#allocation6 + $0x118] sm:$0xff]  ;;  %v2214_v52 = vld [vmem:[#allocation6 + $0xe0] sm:$0xff]  ;;  %v2216_v53 = vld [vmem:[#allocation6 + $0xe8] sm:$0xff] }
  0x3a   : > { %777 = vmatpush.msrb.mxu2 %v2117_v17  ;;  %797 = vmatpush.msrb.mxu3 %v2119_v18  ;;  %v2222_v54 = vld [vmem:[#allocation6 + $0xf0] sm:$0xff]  ;;  %v2224_v55 = vld [vmem:[#allocation6 + $0xf8] sm:$0xff]  ;;  %v2230_v56 = vld [vmem:[#allocation6 + $0xc0] sm:$0xff] }
  0x3b   : > { %738 = vmatpush.msrb.mxu0 %v2123_v20  ;;  %758 = vmatpush.msrb.mxu1 %v2125_v21  ;;  %v2232_v57 = vld [vmem:[#allocation6 + $0xc8] sm:$0xff]  ;;  %v2236_v58 = vld [vmem:[#allocation6 + $0xd0] sm:$0xff]  ;;  %v2238_v59 = vld [vmem:[#allocation6 + $0xd8] sm:$0xff] }
  0x3c   : > { %778 = vmatpush.msrb.mxu2 %v2132_v23  ;;  %798 = vmatpush.msrb.mxu3 %v2134_v24  ;;  %2645 = vst [vmem:[#allocation19_spill] sm:$0xff] %v2236_v58  ;;  %v2242_v60 = vld [vmem:[#allocation6 + $0xa0] sm:$0xff]  ;;  %v2244_v61 = vld [vmem:[#allocation6 + $0xa8] sm:$0xff]  ;;  %v2248_v62 = vld [vmem:[#allocation6 + $0xb0] sm:$0xff] }
  0x3d   : > { %739 = vmatpush.msrb.mxu0 %v2140_v26  ;;  %759 = vmatpush.msrb.mxu1 %v2142_v27  ;;  %2646 = vst [vmem:[#allocation20_spill] sm:$0xff] %v2238_v59  ;;  %v2250_v63 = vld [vmem:[#allocation6 + $0xb8] sm:$0xff]  ;;  %v2254_v0 = vld [vmem:[#allocation6 + $0x80] sm:$0xff]  ;;  %v2256_v1 = vld [vmem:[#allocation6 + $0x88] sm:$0xff] }
  0x3e   : > { %779 = vmatpush.msrb.mxu2 %v2146_v28  ;;  %799 = vmatpush.msrb.mxu3 %v2148_v29  ;;  %2647 = vst [vmem:[#allocation21_spill] sm:$0xff] %v2242_v60  ;;  %v2260_v2 = vld [vmem:[#allocation6 + $0x90] sm:$0xff]  ;;  %v2262_v3 = vld [vmem:[#allocation6 + $0x98] sm:$0xff]  ;;  %v2272_v5 = vld [vmem:[#allocation6 + $0x68] sm:$0xff] }
  0x3f   : > { %1606 = vmatmul.msk.f32.gmra.mxu0 %vm482_vm2, %v478_v4  ;;  %1611 = vmatmul.msk.f32.gmra.mxu1 %vm482_vm2, %v478_v4  ;;  %2648 = vst [vmem:[#allocation22_spill] sm:$0xff] %v2244_v61  ;;  %v2278_v6 = vld [vmem:[#allocation6 + $0x70] sm:$0xff]  ;;  %v2280_v7 = vld [vmem:[#allocation6 + $0x78] sm:$0xff]  ;;  %v2286_v8 = vld [vmem:[#allocation6 + $0x40] sm:$0xff] }
  0x40   : > { %1616 = vmatmul.msk.f32.gmra.mxu2 %vm482_vm2, %v478_v4  ;;  %1621 = vmatmul.msk.f32.gmra.mxu3 %vm482_vm2, %v478_v4  ;;  %2649 = vst [vmem:[#allocation23_spill] sm:$0xff] %v2248_v62  ;;  %v2270_v4 = vld [vmem:[#allocation6 + $0x60] sm:$0xff]  ;;  %v2288_v9 = vld [vmem:[#allocation6 + $0x48] sm:$0xff]  ;;  %v2292_v12 = vld [vmem:[#allocation6 + $0x50] sm:$0xff] }
  0x41   : > { %740 = vmatpush.msrb.mxu0 %v2159_v32  ;;  %760 = vmatpush.msrb.mxu1 %v2161_v33  ;;  %2650 = vst [vmem:[#allocation24_spill] sm:$0xff] %v2250_v63  ;;  %v2294_v19 = vld [vmem:[#allocation6 + $0x58] sm:$0xff]  ;;  %v2300_v25 = vld [vmem:[#allocation6 + $0x28] sm:$0xff]  ;;  %v2304_v30 = vld [vmem:[#allocation6 + $0x30] sm:$0xff] }
  0x42   : > { %780 = vmatpush.msrb.mxu2 %v2167_v36  ;;  %800 = vmatpush.msrb.mxu3 %v2169_v37  ;;  %2651 = vst [vmem:[#allocation25_spill] sm:$0xff] %v2254_v0  ;;  %v2310_v34 = vld [vmem:[#allocation6] sm:$0xff]  ;;  %v2312_v35 = vld [vmem:[#allocation6 + $0x8] sm:$0xff]  ;;  %v2316_v38 = vld [vmem:[#allocation6 + $0x10] sm:$0xff] }
  0x43   : > { %741 = vmatpush.msrb.mxu0 %v2173_v39  ;;  %761 = vmatpush.msrb.mxu1 %v2175_v40  ;;  %2652 = vst [vmem:[#allocation26_spill] sm:$0xff] %v2256_v1  ;;  %v2318_v43 = vld [vmem:[#allocation6 + $0x18] sm:$0xff] }
  0x44   : > { %781 = vmatpush.msrb.mxu2 %v2179_v41  ;;  %801 = vmatpush.msrb.mxu3 %v2181_v42  ;;  %2653 = vst [vmem:[#allocation27_spill] sm:$0xff] %v2260_v2 }
  0x45   : > { %742 = vmatpush.msrb.mxu0 %v2185_v44  ;;  %762 = vmatpush.msrb.mxu1 %v2187_v45  ;;  %2654 = vst [vmem:[#allocation28_spill] sm:$0xff] %v2262_v3 }
  0x46   : > { %782 = vmatpush.msrb.mxu2 %v2191_v46  ;;  %802 = vmatpush.msrb.mxu3 %v2193_v47  ;;  %2655 = vst [vmem:[#allocation29_spill] sm:$0xff] %v2270_v4 }
  0x47   : > { %743 = vmatpush.msrb.mxu0 %v2198_v48  ;;  %763 = vmatpush.msrb.mxu1 %v2200_v49  ;;  %2656 = vst [vmem:[#allocation30_spill] sm:$0xff] %v2272_v5 }
  0x48   : > { %783 = vmatpush.msrb.mxu2 %v2204_v50  ;;  %803 = vmatpush.msrb.mxu3 %v2206_v51  ;;  %2657 = vst [vmem:[#allocation31_spill] sm:$0xff] %v2278_v6 }
  0x49   : > { %1607 = vmatmul.msk.f32.gmra.mxu0 %vm482_vm2, %v2128_v22  ;;  %1612 = vmatmul.msk.f32.gmra.mxu1 %vm482_vm2, %v2128_v22  ;;  %2658 = vst [vmem:[#allocation32_spill] sm:$0xff] %v2280_v7 }
  0x4a   : > { %1617 = vmatmul.msk.f32.gmra.mxu2 %vm482_vm2, %v2128_v22  ;;  %1622 = vmatmul.msk.f32.gmra.mxu3 %vm482_vm2, %v2128_v22  ;;  %2659 = vst [vmem:[#allocation33_spill] sm:$0xff] %v2286_v8  ;;  %v2298_v22 = vld [vmem:[#allocation6 + $0x20] sm:$0xff] }
  0x4b   : > { %744 = vmatpush.msrb.mxu0 %v2214_v52  ;;  %764 = vmatpush.msrb.mxu1 %v2216_v53  ;;  %2660 = vst [vmem:[#allocation34_spill] sm:$0xff] %v2288_v9 }
  0x4c   : > { %784 = vmatpush.msrb.mxu2 %v2222_v54  ;;  %804 = vmatpush.msrb.mxu3 %v2224_v55  ;;  %2661 = vst [vmem:[#allocation35_spill] sm:$0xff] %v2292_v12 }
  0x4d   : > { %745 = vmatpush.msrb.mxu0 %v2230_v56  ;;  %765 = vmatpush.msrb.mxu1 %v2232_v57  ;;  %2662 = vst [vmem:[#allocation36_spill] sm:$0xff] %v2294_v19 }
  0x4e   : > { %785 = vmatpush.msrb.mxu2 %v2236_v58  ;;  %805 = vmatpush.msrb.mxu3 %v2238_v59  ;;  %2663 = vst [vmem:[#allocation37_spill] sm:$0xff] %v2298_v22 }
  0x4f   : > { %746 = vmatpush.msrb.mxu0 %v2242_v60  ;;  %766 = vmatpush.msrb.mxu1 %v2244_v61  ;;  %2664 = vst [vmem:[#allocation38_spill] sm:$0xff] %v2300_v25 }
  0x50   : > { %786 = vmatpush.msrb.mxu2 %v2248_v62  ;;  %806 = vmatpush.msrb.mxu3 %v2250_v63  ;;  %2665 = vst [vmem:[#allocation39_spill] sm:$0xff] %v2304_v30 }
  0x51   : > { %747 = vmatpush.msrb.mxu0 %v2254_v0  ;;  %767 = vmatpush.msrb.mxu1 %v2256_v1  ;;  %2667 = vst [vmem:[#allocation41_spill] sm:$0xff] %v2310_v34 }
  0x52   : > { %787 = vmatpush.msrb.mxu2 %v2260_v2  ;;  %807 = vmatpush.msrb.mxu3 %v2262_v3  ;;  %2668 = vst [vmem:[#allocation42_spill] sm:$0xff] %v2312_v35 }
  0x53   : > { %1608 = vmatmul.msk.f32.gmra.mxu0 %vm482_vm2, %v2155_v31  ;;  %1613 = vmatmul.msk.f32.gmra.mxu1 %vm482_vm2, %v2155_v31  ;;  %2669 = vst [vmem:[#allocation43_spill] sm:$0xff] %v2316_v38 }
  0x54   : > { %1618 = vmatmul.msk.f32.gmra.mxu2 %vm482_vm2, %v2155_v31  ;;  %1623 = vmatmul.msk.f32.gmra.mxu3 %vm482_vm2, %v2155_v31  ;;  %v2306_v31 = vld [vmem:[#allocation6 + $0x38] sm:$0xff]  ;;  %2670 = vst [vmem:[#allocation44_spill] sm:$0xff] %v2318_v43 }
  0x55   : > { %748 = vmatpush.msrb.mxu0 %v2270_v4  ;;  %768 = vmatpush.msrb.mxu1 %v2272_v5  ;;  %2666 = vst [vmem:[#allocation40_spill] sm:$0xff] %v2306_v31 }
  0x56   : > { %788 = vmatpush.msrb.mxu2 %v2278_v6  ;;  %808 = vmatpush.msrb.mxu3 %v2280_v7 }
  0x57   : > { %749 = vmatpush.msrb.mxu0 %v2286_v8  ;;  %769 = vmatpush.msrb.mxu1 %v2288_v9  ;;  %v730_v9 = vld [vmem:[#allocation3] sm:$0xff] }
  0x58   : > { %789 = vmatpush.msrb.mxu2 %v2292_v12  ;;  %809 = vmatpush.msrb.mxu3 %v2294_v19 }
  0x59   : > { %750 = vmatpush.msrb.mxu0 %v2298_v22  ;;  %770 = vmatpush.msrb.mxu1 %v2300_v25 }
  0x5a   : > { %790 = vmatpush.msrb.mxu2 %v2304_v30  ;;  %810 = vmatpush.msrb.mxu3 %v2306_v31 }
  0x5b   : > { %751 = vmatpush.msrb.mxu0 %v2310_v34  ;;  %771 = vmatpush.msrb.mxu1 %v2312_v35 }
  0x5c   : > { %791 = vmatpush.msrb.mxu2 %v2316_v38  ;;  %811 = vmatpush.msrb.mxu3 %v2318_v43 }
  0x5d   : > { %752 = vmatmul.f32.vlgmr.msrb.gmra.mxu0 %v730_v9  ;;  %772 = vmatmul.f32.vlgmr.msrb.gmra.mxu1 %v730_v9 }
  0x5e   : > { %792 = vmatmul.f32.vlgmr.msrb.gmra.mxu2 %v730_v9  ;;  %812 = vmatmul.f32.vlgmr.msrb.gmra.mxu3 %v730_v9  ;;  %v2671_v9 = vld [vmem:[#allocation34_spill] sm:$0xff] }
  0x5f   : > { %888 = vmatpush.msra.mxu0 %v2098_v10  ;;  %908 = vmatpush.msra.mxu1 %v2100_v11 }
  0x60   : > { %928 = vmatpush.msra.mxu2 %v2105_v13  ;;  %948 = vmatpush.msra.mxu3 %v2107_v14 }
  0x61   : > { %889 = vmatpush.msra.mxu0 %v2111_v15  ;;  %909 = vmatpush.msra.mxu1 %v2113_v16 }
  0x62   : > { %929 = vmatpush.msra.mxu2 %v2117_v17  ;;  %949 = vmatpush.msra.mxu3 %v2119_v18 }
  0x63   : > { %890 = vmatpush.msra.mxu0 %v2123_v20  ;;  %910 = vmatpush.msra.mxu1 %v2125_v21 }
  0x64   : > { %930 = vmatpush.msra.mxu2 %v2132_v23  ;;  %950 = vmatpush.msra.mxu3 %v2134_v24 }
  0x65   : > { %891 = vmatpush.msra.mxu0 %v2140_v26  ;;  %911 = vmatpush.msra.mxu1 %v2142_v27 }
  0x66   : > { %931 = vmatpush.msra.mxu2 %v2146_v28  ;;  %951 = vmatpush.msra.mxu3 %v2148_v29 }
  0x67   : > { %892 = vmatpush.msra.mxu0 %v2159_v32  ;;  %912 = vmatpush.msra.mxu1 %v2161_v33 }
  0x68   : > { %932 = vmatpush.msra.mxu2 %v2167_v36  ;;  %952 = vmatpush.msra.mxu3 %v2169_v37 }
  0x69   : > { %893 = vmatpush.msra.mxu0 %v2173_v39  ;;  %913 = vmatpush.msra.mxu1 %v2175_v40 }
  0x6a   : > { %933 = vmatpush.msra.mxu2 %v2179_v41  ;;  %953 = vmatpush.msra.mxu3 %v2181_v42 }
  0x6b   : > { %894 = vmatpush.msra.mxu0 %v2185_v44  ;;  %914 = vmatpush.msra.mxu1 %v2187_v45 }
  0x6c   : > { %934 = vmatpush.msra.mxu2 %v2191_v46  ;;  %954 = vmatpush.msra.mxu3 %v2193_v47 }
  0x6d   : > { %895 = vmatpush.msra.mxu0 %v2198_v48  ;;  %915 = vmatpush.msra.mxu1 %v2200_v49 }
  0x6e   : > { %935 = vmatpush.msra.mxu2 %v2204_v50  ;;  %955 = vmatpush.msra.mxu3 %v2206_v51 }
  0x6f   : > { %896 = vmatpush.msra.mxu0 %v2214_v52  ;;  %916 = vmatpush.msra.mxu1 %v2216_v53 }
  0x70   : > { %936 = vmatpush.msra.mxu2 %v2222_v54  ;;  %956 = vmatpush.msra.mxu3 %v2224_v55 }
  0x71   : > { %897 = vmatpush.msra.mxu0 %v2230_v56  ;;  %917 = vmatpush.msra.mxu1 %v2232_v57 }
  0x72   : > { %937 = vmatpush.msra.mxu2 %v2236_v58  ;;  %957 = vmatpush.msra.mxu3 %v2238_v59 }
  0x73   : > { %898 = vmatpush.msra.mxu0 %v2242_v60  ;;  %918 = vmatpush.msra.mxu1 %v2244_v61 }
  0x74   : > { %938 = vmatpush.msra.mxu2 %v2248_v62  ;;  %958 = vmatpush.msra.mxu3 %v2250_v63 }
  0x75   : > { %899 = vmatpush.msra.mxu0 %v2254_v0  ;;  %919 = vmatpush.msra.mxu1 %v2256_v1 }
  0x76   : > { %939 = vmatpush.msra.mxu2 %v2260_v2  ;;  %959 = vmatpush.msra.mxu3 %v2262_v3 }
  0x77   : > { %900 = vmatpush.msra.mxu0 %v2270_v4  ;;  %920 = vmatpush.msra.mxu1 %v2272_v5 }
  0x78   : > { %940 = vmatpush.msra.mxu2 %v2278_v6  ;;  %960 = vmatpush.msra.mxu3 %v2280_v7 }
  0x79   : > { %901 = vmatpush.msra.mxu0 %v2286_v8  ;;  %921 = vmatpush.msra.mxu1 %v2671_v9 }
  0x7a   : > { %941 = vmatpush.msra.mxu2 %v2292_v12  ;;  %961 = vmatpush.msra.mxu3 %v2294_v19 }
  0x7b   : > { %902 = vmatpush.msra.mxu0 %v2298_v22  ;;  %922 = vmatpush.msra.mxu1 %v2300_v25 }
  0x7c   : > { %942 = vmatpush.msra.mxu2 %v2304_v30  ;;  %962 = vmatpush.msra.mxu3 %v2306_v31 }
  0x7d   : > { %903 = vmatpush.msra.mxu0 %v2310_v34  ;;  %923 = vmatpush.msra.mxu1 %v2312_v35 }
  0x7e   : > { %943 = vmatpush.msra.mxu2 %v2316_v38  ;;  %963 = vmatpush.msra.mxu3 %v2318_v43 }
  0x7f   : > { %1040 = vmatpush.msrb.mxu0 %v2098_v10  ;;  %1060 = vmatpush.msrb.mxu1 %v2100_v11 }
  0x80   : > { %1080 = vmatpush.msrb.mxu2 %v2105_v13  ;;  %1100 = vmatpush.msrb.mxu3 %v2107_v14 }
  0x81   : > { %1041 = vmatpush.msrb.mxu0 %v2111_v15  ;;  %1061 = vmatpush.msrb.mxu1 %v2113_v16 }
  0x82   : > { %1081 = vmatpush.msrb.mxu2 %v2117_v17  ;;  %1101 = vmatpush.msrb.mxu3 %v2119_v18 }
  0x83   : > { %1042 = vmatpush.msrb.mxu0 %v2123_v20  ;;  %1062 = vmatpush.msrb.mxu1 %v2125_v21 }
  0x84   : > { %1082 = vmatpush.msrb.mxu2 %v2132_v23  ;;  %1102 = vmatpush.msrb.mxu3 %v2134_v24 }
  0x85   : > { %1043 = vmatpush.msrb.mxu0 %v2140_v26  ;;  %1063 = vmatpush.msrb.mxu1 %v2142_v27 }
  0x86   : > { %1083 = vmatpush.msrb.mxu2 %v2146_v28  ;;  %1103 = vmatpush.msrb.mxu3 %v2148_v29 }
  0x87   : > { %1044 = vmatpush.msrb.mxu0 %v2159_v32  ;;  %1064 = vmatpush.msrb.mxu1 %v2161_v33 }
  0x88   : > { %1084 = vmatpush.msrb.mxu2 %v2167_v36  ;;  %1104 = vmatpush.msrb.mxu3 %v2169_v37 }
  0x89   : > { %1045 = vmatpush.msrb.mxu0 %v2173_v39  ;;  %1065 = vmatpush.msrb.mxu1 %v2175_v40 }
  0x8a   : > { %1085 = vmatpush.msrb.mxu2 %v2179_v41  ;;  %1105 = vmatpush.msrb.mxu3 %v2181_v42 }
  0x8b   : > { %1046 = vmatpush.msrb.mxu0 %v2185_v44  ;;  %1066 = vmatpush.msrb.mxu1 %v2187_v45 }
  0x8c   : > { %1086 = vmatpush.msrb.mxu2 %v2191_v46  ;;  %1106 = vmatpush.msrb.mxu3 %v2193_v47 }
  0x8d   : > { %1047 = vmatpush.msrb.mxu0 %v2198_v48  ;;  %1067 = vmatpush.msrb.mxu1 %v2200_v49 }
  0x8e   : > { %1087 = vmatpush.msrb.mxu2 %v2204_v50  ;;  %1107 = vmatpush.msrb.mxu3 %v2206_v51 }
  0x8f   : > { %1048 = vmatpush.msrb.mxu0 %v2214_v52  ;;  %1068 = vmatpush.msrb.mxu1 %v2216_v53 }
  0x90   : > { %1088 = vmatpush.msrb.mxu2 %v2222_v54  ;;  %1108 = vmatpush.msrb.mxu3 %v2224_v55 }
  0x91   : > { %1049 = vmatpush.msrb.mxu0 %v2230_v56  ;;  %1069 = vmatpush.msrb.mxu1 %v2232_v57 }
  0x92   : > { %1089 = vmatpush.msrb.mxu2 %v2236_v58  ;;  %1109 = vmatpush.msrb.mxu3 %v2238_v59 }
  0x93   : > { %1050 = vmatpush.msrb.mxu0 %v2242_v60  ;;  %1070 = vmatpush.msrb.mxu1 %v2244_v61 }
  0x94   : > { %1090 = vmatpush.msrb.mxu2 %v2248_v62  ;;  %1110 = vmatpush.msrb.mxu3 %v2250_v63 }
  0x95   : > { %1051 = vmatpush.msrb.mxu0 %v2254_v0  ;;  %1071 = vmatpush.msrb.mxu1 %v2256_v1 }
  0x96   : > { %1091 = vmatpush.msrb.mxu2 %v2260_v2  ;;  %1111 = vmatpush.msrb.mxu3 %v2262_v3 }
  0x97   : > { %1052 = vmatpush.msrb.mxu0 %v2270_v4  ;;  %1072 = vmatpush.msrb.mxu1 %v2272_v5 }
  0x98   : > { %1092 = vmatpush.msrb.mxu2 %v2278_v6  ;;  %1112 = vmatpush.msrb.mxu3 %v2280_v7 }
  0x99   : > { %1053 = vmatpush.msrb.mxu0 %v2286_v8  ;;  %1073 = vmatpush.msrb.mxu1 %v2671_v9 }
  0x9a   : > { %1093 = vmatpush.msrb.mxu2 %v2292_v12  ;;  %1113 = vmatpush.msrb.mxu3 %v2294_v19 }
  0x9b   : > { %1054 = vmatpush.msrb.mxu0 %v2298_v22  ;;  %1074 = vmatpush.msrb.mxu1 %v2300_v25  ;;  %v494_v22 = vld [vmem:[%s2601_s3] sm:$0xf] }
  0x9c   : > { %1094 = vmatpush.msrb.mxu2 %v2304_v30  ;;  %1114 = vmatpush.msrb.mxu3 %v2306_v31  ;;  %v496_v8 = vperm.slane %v494_v22, 0  ;;  %v497_v30 = vperm.slane %v494_v22, 1 }
  0x9d   : > { %1055 = vmatpush.msrb.mxu0 %v2310_v34  ;;  %1075 = vmatpush.msrb.mxu1 %v2312_v35  ;;  %v498_v35 = vperm.slane %v494_v22, 2 }
  0x9e   : > { %1095 = vmatpush.msrb.mxu2 %v2316_v38  ;;  %1115 = vmatpush.msrb.mxu3 %v2318_v43  ;;  %v499_v38 = vperm.slane %v494_v22, 3 }
  0xb2   : > { %v551_v9 = vpop.f32.mrf.mxu0  ;;  %v580_v12 = vpop.f32.mrf.mxu1 }
  0xb9   : > { %v609_v19 = vpop.f32.mrf.mxu2  ;;  %v638_v25 = vpop.f32.mrf.mxu3 }
  0xba   : > { %v639_v59 = vadd.f32 %v638_v25, %v499_v38 }
  0xbc   : > { %v554_v7 = vpop.f32.mrf.mxu0  ;;  %v583_v31 = vpop.f32.mrf.mxu1 }
  0xbd   : > { %v2457_v6 = vadd.f32 %v554_v7, %v496_v8  ;;  %v2459_v34 = vadd.f32 %v583_v31, %v497_v30 }
  0xbf   : > { %2672 = vst [vmem:[#allocation45_spill] sm:$0xff] %v2457_v6 }
  0xc0   : > { %2673 = vst [vmem:[#allocation46_spill] sm:$0xff] %v2459_v34 }
  0xc3   : > { %v612_v5 = vpop.f32.mrf.mxu2  ;;  %v641_v43 = vpop.f32.mrf.mxu3 }
  0xc4   : > { %v2461_v4 = vadd.f32 %v612_v5, %v498_v35  ;;  %v2463_v3 = vadd.f32 %v641_v43, %v499_v38 }
  0xc6   : > { %2674 = vst [vmem:[#allocation47_spill] sm:$0xff] %v2461_v4  ;;  %v557_v2 = vpop.f32.mrf.mxu0  ;;  %v586_v1 = vpop.f32.mrf.mxu1 }
  0xc7   : > { %2675 = vst [vmem:[#allocation48_spill] sm:$0xff] %v2463_v3  ;;  %v2465_v0 = vadd.f32 %v557_v2, %v496_v8  ;;  %v2467_v63 = vadd.f32 %v586_v1, %v497_v30  ;;  %v552_v1 = vadd.f32 %v551_v9, %v496_v8 }
  0xc9   : > { %2676 = vst [vmem:[#allocation49_spill] sm:$0xff] %v2465_v0 }
  0xca   : > { %2677 = vst [vmem:[#allocation50_spill] sm:$0xff] %v2467_v63  ;;  %v581_v63 = vadd.f32 %v580_v12, %v497_v30 }
  0xcd   : > { %v615_v62 = vpop.f32.mrf.mxu2  ;;  %v644_v61 = vpop.f32.mrf.mxu3 }
  0xce   : > { %v2469_v7 = vadd.f32 %v615_v62, %v498_v35  ;;  %v2471_v31 = vadd.f32 %v644_v61, %v499_v38 }
  0xd0   : > { %2678 = vst [vmem:[#allocation51_spill] sm:$0xff] %v2469_v7  ;;  %v560_v34 = vpop.f32.mrf.mxu0  ;;  %v589_v22 = vpop.f32.mrf.mxu1 }
  0xd1   : > { %2679 = vst [vmem:[#allocation52_spill] sm:$0xff] %v2471_v31  ;;  %v2473_v6 = vadd.f32 %v560_v34, %v496_v8  ;;  %v2475_v5 = vadd.f32 %v589_v22, %v497_v30  ;;  %v610_v30 = vadd.f32 %v609_v19, %v498_v35 }
  0xd3   : > { %2680 = vst [vmem:[#allocation53_spill] sm:$0xff] %v2473_v6 }
  0xd4   : > { %2681 = vst [vmem:[#allocation54_spill] sm:$0xff] %v2475_v5 }
  0xd7   : > { %v618_v43 = vpop.f32.mrf.mxu2  ;;  %v647_v4 = vpop.f32.mrf.mxu3 }
  0xd8   : > { %v2477_v3 = vadd.f32 %v618_v43, %v498_v35  ;;  %v2479_v2 = vadd.f32 %v647_v4, %v499_v38 }
  0xda   : > { %2682 = vst [vmem:[#allocation55_spill] sm:$0xff] %v2477_v3  ;;  %v753_v0 = vpop.f32.mrf.mxu0  ;;  %v773_v60 = vpop.f32.mrf.mxu1 }
  0xdb   : > { %2683 = vst [vmem:[#allocation56_spill] sm:$0xff] %v2479_v2  ;;  %v816_v62 = vadd.f32 %v753_v0, %v552_v1  ;;  %v817_v7 = vadd.f32 %v773_v60, %v581_v63 }
  0xdd   : > { %v1624_v61 = vmul.f32 -1.442695, %v816_v62  ;;  %v1625_v31 = vmul.f32 -1.442695, %v817_v7 }
  0xdf   : > { %1704 = vpow2.f32 %v1624_v61 }
  0xe0   : > { %1706 = vpow2.f32 %v1625_v31 }
  0xe1   : > { %v813_v34 = vpop.f32.mrf.mxu3  ;;  %v793_v8 = vpop.f32.mrf.mxu2 }
  0xe2   : > { %v819_v22 = vadd.f32 %v813_v34, %v639_v59  ;;  %v818_v63 = vadd.f32 %v793_v8, %v610_v30 }
  0xe4   : > { %v1626_v5 = vmul.f32 -1.442695, %v819_v22 }
  0xe5   : > { %v1705_v6 = vpop.eup %1704 }
  0xe6   : > { %v1707_v58 = vpop.eup %1706  ;;  %v823_v43 = vadd.f32 1.0, %v1705_v6  ;;  %1708 = vpow2.f32 %v1626_v5 }
  0xe7   : > { %v842_v4 = vadd.f32 1.0, %v1707_v58 }
  0xe8   : > { %1710 = vrcp.f32 %v823_v43  ;;  %v835_v31 = vand.u32 2147483648, %v823_v43  ;;  %v833_v58 = vand.u32 2147483647, %v823_v43  ;;  %vm829_vm5 = vweird.f32 %v823_v43 }
  0xe9   : > { %1712 = vrcp.f32 %v842_v4  ;;  %v854_v1 = vand.u32 2147483648, %v842_v4  ;;  %v852_v62 = vand.u32 2147483647, %v842_v4  ;;  %vm848_vm6 = vweird.f32 %v842_v4 }
  0xea   : > { %v836_v35 = vor.u32 1.1754944e-38, %v835_v31  ;;  %vm834_vm9 = vcmp.eq.f32.partialorder %v833_v58, 8.507059e+37 }
  0xeb   : > { %v855_v8 = vor.u32 1.1754944e-38, %v854_v1  ;;  %vm853_vm10 = vcmp.eq.f32.partialorder %v852_v62, 8.507059e+37 }
  0xec   : > { %v1709_v12 = vpop.eup %1708 }
  0xed   : > { %v862_v0 = vadd.f32 1.0, %v1709_v12  ;;  %v731_v12 = vld [vmem:[#allocation4] sm:$0xff] }
  0xee   : > { %v1711_v60 = vpop.eup %1710 }
  0xef   : > { %v1713_v9 = vpop.eup %1712  ;;  %v825_v7 = vmul.f32 %v1711_v60, %v823_v43  ;;  %1714 = vrcp.f32 %v862_v0  ;;  %vm830_vm3 = vweird.f32 %v1711_v60  ;;  %v874_v31 = vand.u32 2147483648, %v862_v0 }
  0xf0   : > { %v844_v25 = vmul.f32 %v1713_v9, %v842_v4  ;;  %1716 = vtanh.f32 %v818_v63  ;;  %vm849_vm4 = vweird.f32 %v1713_v9  ;;  %vm831_vm7 = vmor %vm829_vm5, %vm830_vm3  ;;  %vm868_vm12 = vweird.f32 %v862_v0 }
  0xf1   : > { %v826_v38 = vsub.f32 1.0, %v825_v7  ;;  %vm850_vm8 = vmor %vm848_vm6, %vm849_vm4  ;;  %v872_v1 = vand.u32 2147483647, %v862_v0  ;;  %v875_v58 = vor.u32 1.1754944e-38, %v874_v31 }
  0xf2   : > { %v845_v59 = vsub.f32 1.0, %v844_v25 }
  0xf3   : > { %v827_v6 = vmul.f32 %v1711_v60, %v826_v38  ;;  %vm873_vm14 = vcmp.eq.f32.partialorder %v872_v1, 8.507059e+37 }
  0xf4   : > { %v846_v5 = vmul.f32 %v1713_v9, %v845_v59 }
  0xf5   : > { %v1715_v61 = vpop.eup %1714  ;;  %v828_v19 = vadd.f32 %v1711_v60, %v827_v6 }
  0xf6   : > { %v847_v34 = vadd.f32 %v1713_v9, %v846_v5  ;;  %v864_v22 = vmul.f32 %v1715_v61, %v862_v0  ;;  %v1717_v63 = vpop.eup %1716  ;;  %vm869_vm11 = vweird.f32 %v1715_v61 }
  0xf7   : > { %v832_v30 = vsel %vm831_vm7, %v1711_v60, %v828_v19  ;;  %vm870_vm13 = vmor %vm868_vm12, %vm869_vm11 }
  0xf8   : > { %v837_v7 = vsel %vm834_vm9, %v836_v35, %v832_v30  ;;  %v851_v25 = vsel %vm850_vm8, %v1713_v9, %v847_v34  ;;  %v865_v38 = vsub.f32 1.0, %v864_v22 }
  0xf9   : > { %v856_v59 = vsel %vm853_vm10, %v855_v8, %v851_v25  ;;  %v879_v3 = vmul.f32 %v1717_v63, %v837_v7  ;;  %v2713_v8 = vld [vmem:[#allocation47_spill] sm:$0xff] }
  0xfa   : > { %v878_v2 = vmul.f32 %v856_v59, %v731_v12  ;;  %v866_v6 = vmul.f32 %v1715_v61, %v865_v38 }
  0xfc   : > { %v2481_v43 = vadd.f32 %v879_v3, %v878_v2  ;;  %v867_v4 = vadd.f32 %v1715_v61, %v866_v6 }
  0xfe   : > { %1718 = vtanh.f32 %v2481_v43  ;;  %v871_v60 = vsel %vm870_vm13, %v1715_v61, %v867_v4 }
  0xff   : > { %v876_v5 = vsel %vm873_vm14, %v875_v58, %v871_v60 }
 0x104   : > { %v1719_v9 = vpop.eup %1718 }
 0x105   : > { %v882_v62 = vmul.f32 %v1719_v9, %v876_v5 }
 0x107   : > { %904 = vmatmul.f32.vlgmr.msra.gmra.mxu0 %v882_v62  ;;  %924 = vmatmul.f32.vlgmr.msra.gmra.mxu1 %v882_v62 }
 0x108   : > { %944 = vmatmul.f32.vlgmr.msra.gmra.mxu2 %v882_v62  ;;  %964 = vmatmul.f32.vlgmr.msra.gmra.mxu3 %v882_v62 }
 0x109   : > { %1192 = vmatpush.msra.mxu0 %v2098_v10  ;;  %1212 = vmatpush.msra.mxu1 %v2100_v11  ;;  %v2684_v10 = vld [vmem:[#allocation19_spill] sm:$0xff]  ;;  %v2685_v11 = vld [vmem:[#allocation20_spill] sm:$0xff] }
 0x10a   : > { %1232 = vmatpush.msra.mxu2 %v2105_v13  ;;  %1252 = vmatpush.msra.mxu3 %v2107_v14  ;;  %v2686_v13 = vld [vmem:[#allocation21_spill] sm:$0xff]  ;;  %v2687_v14 = vld [vmem:[#allocation22_spill] sm:$0xff] }
 0x10b   : > { %1193 = vmatpush.msra.mxu0 %v2111_v15  ;;  %1213 = vmatpush.msra.mxu1 %v2113_v16  ;;  %v2688_v15 = vld [vmem:[#allocation23_spill] sm:$0xff]  ;;  %v2689_v16 = vld [vmem:[#allocation24_spill] sm:$0xff] }
 0x10c   : > { %1233 = vmatpush.msra.mxu2 %v2117_v17  ;;  %1253 = vmatpush.msra.mxu3 %v2119_v18  ;;  %v2690_v17 = vld [vmem:[#allocation25_spill] sm:$0xff]  ;;  %v2691_v18 = vld [vmem:[#allocation26_spill] sm:$0xff] }
 0x10d   : > { %1194 = vmatpush.msra.mxu0 %v2123_v20  ;;  %1214 = vmatpush.msra.mxu1 %v2125_v21  ;;  %v2692_v20 = vld [vmem:[#allocation27_spill] sm:$0xff]  ;;  %v2693_v21 = vld [vmem:[#allocation28_spill] sm:$0xff] }
 0x10e   : > { %1234 = vmatpush.msra.mxu2 %v2132_v23  ;;  %1254 = vmatpush.msra.mxu3 %v2134_v24  ;;  %v2694_v23 = vld [vmem:[#allocation29_spill] sm:$0xff]  ;;  %v2695_v24 = vld [vmem:[#allocation30_spill] sm:$0xff] }
 0x10f   : > { %1195 = vmatpush.msra.mxu0 %v2140_v26  ;;  %1215 = vmatpush.msra.mxu1 %v2142_v27  ;;  %v2696_v26 = vld [vmem:[#allocation31_spill] sm:$0xff]  ;;  %v2697_v27 = vld [vmem:[#allocation32_spill] sm:$0xff] }
 0x110   : > { %1235 = vmatpush.msra.mxu2 %v2146_v28  ;;  %1255 = vmatpush.msra.mxu3 %v2148_v29  ;;  %v2698_v28 = vld [vmem:[#allocation33_spill] sm:$0xff]  ;;  %v2699_v29 = vld [vmem:[#allocation34_spill] sm:$0xff] }
 0x111   : > { %1196 = vmatpush.msra.mxu0 %v2159_v32  ;;  %1216 = vmatpush.msra.mxu1 %v2161_v33  ;;  %v2700_v32 = vld [vmem:[#allocation35_spill] sm:$0xff]  ;;  %v2701_v33 = vld [vmem:[#allocation36_spill] sm:$0xff] }
 0x112   : > { %1236 = vmatpush.msra.mxu2 %v2167_v36  ;;  %1256 = vmatpush.msra.mxu3 %v2169_v37  ;;  %v2702_v36 = vld [vmem:[#allocation37_spill] sm:$0xff]  ;;  %v2703_v37 = vld [vmem:[#allocation38_spill] sm:$0xff] }
 0x113   : > { %1197 = vmatpush.msra.mxu0 %v2173_v39  ;;  %1217 = vmatpush.msra.mxu1 %v2175_v40  ;;  %v2704_v39 = vld [vmem:[#allocation39_spill] sm:$0xff]  ;;  %v2705_v40 = vld [vmem:[#allocation40_spill] sm:$0xff] }
 0x114   : > { %1237 = vmatpush.msra.mxu2 %v2179_v41  ;;  %1257 = vmatpush.msra.mxu3 %v2181_v42  ;;  %v2706_v41 = vld [vmem:[#allocation41_spill] sm:$0xff]  ;;  %v2707_v42 = vld [vmem:[#allocation42_spill] sm:$0xff] }
 0x115   : > { %1198 = vmatpush.msra.mxu0 %v2185_v44  ;;  %1218 = vmatpush.msra.mxu1 %v2187_v45  ;;  %v2708_v44 = vld [vmem:[#allocation43_spill] sm:$0xff]  ;;  %v2709_v45 = vld [vmem:[#allocation44_spill] sm:$0xff] }
 0x116   : > { %1238 = vmatpush.msra.mxu2 %v2191_v46  ;;  %1258 = vmatpush.msra.mxu3 %v2193_v47 }
 0x117   : > { %1199 = vmatpush.msra.mxu0 %v2198_v48  ;;  %1219 = vmatpush.msra.mxu1 %v2200_v49  ;;  %v2710_v48 = vld [vmem:[#allocation45_spill] sm:$0xff] }
 0x118   : > { %1239 = vmatpush.msra.mxu2 %v2204_v50  ;;  %1259 = vmatpush.msra.mxu3 %v2206_v51  ;;  %v2711_v50 = vld [vmem:[#allocation46_spill] sm:$0xff] }
 0x119   : > { %1200 = vmatpush.msra.mxu0 %v2214_v52  ;;  %1220 = vmatpush.msra.mxu1 %v2216_v53 }
 0x11a   : > { %1240 = vmatpush.msra.mxu2 %v2222_v54  ;;  %1260 = vmatpush.msra.mxu3 %v2224_v55  ;;  %v2712_v55 = vld [vmem:[#allocation48_spill] sm:$0xff] }
 0x11b   : > { %1201 = vmatpush.msra.mxu0 %v2230_v56  ;;  %1221 = vmatpush.msra.mxu1 %v2232_v57 }
 0x11c   : > { %1241 = vmatpush.msra.mxu2 %v2684_v10  ;;  %1261 = vmatpush.msra.mxu3 %v2685_v11 }
 0x11d   : > { %1202 = vmatpush.msra.mxu0 %v2686_v13  ;;  %1222 = vmatpush.msra.mxu1 %v2687_v14 }
 0x11e   : > { %1242 = vmatpush.msra.mxu2 %v2688_v15  ;;  %1262 = vmatpush.msra.mxu3 %v2689_v16 }
 0x11f   : > { %1203 = vmatpush.msra.mxu0 %v2690_v17  ;;  %1223 = vmatpush.msra.mxu1 %v2691_v18 }
 0x120   : > { %1243 = vmatpush.msra.mxu2 %v2692_v20  ;;  %1263 = vmatpush.msra.mxu3 %v2693_v21 }
 0x121   : > { %1204 = vmatpush.msra.mxu0 %v2694_v23  ;;  %1224 = vmatpush.msra.mxu1 %v2695_v24 }
 0x122   : > { %1244 = vmatpush.msra.mxu2 %v2696_v26  ;;  %1264 = vmatpush.msra.mxu3 %v2697_v27 }
 0x123   : > { %1205 = vmatpush.msra.mxu0 %v2698_v28  ;;  %1225 = vmatpush.msra.mxu1 %v2699_v29 }
 0x124   : > { %1245 = vmatpush.msra.mxu2 %v2700_v32  ;;  %1265 = vmatpush.msra.mxu3 %v2701_v33 }
 0x125   : > { %1206 = vmatpush.msra.mxu0 %v2702_v36  ;;  %1226 = vmatpush.msra.mxu1 %v2703_v37 }
 0x126   : > { %1246 = vmatpush.msra.mxu2 %v2704_v39  ;;  %1266 = vmatpush.msra.mxu3 %v2705_v40  ;;  %v2714_v40 = vld [vmem:[#allocation49_spill] sm:$0xff] }
 0x127   : > { %1207 = vmatpush.msra.mxu0 %v2706_v41  ;;  %1227 = vmatpush.msra.mxu1 %v2707_v42  ;;  %v2715_v42 = vld [vmem:[#allocation50_spill] sm:$0xff] }
 0x128   : > { %1247 = vmatpush.msra.mxu2 %v2708_v44  ;;  %1267 = vmatpush.msra.mxu3 %v2709_v45 }
 0x184   : > { %v905_v46 = vpop.f32.mrf.mxu0  ;;  %v925_v47 = vpop.f32.mrf.mxu1 }
 0x185   : > { %v968_v49 = vadd.f32 %v905_v46, %v2710_v48  ;;  %v969_v51 = vadd.f32 %v925_v47, %v2711_v50  ;;  %v2716_v48 = vld [vmem:[#allocation52_spill] sm:$0xff] }
 0x187   : > { %v1627_v52 = vmul.f32 -1.442695, %v968_v49  ;;  %v1628_v53 = vmul.f32 -1.442695, %v969_v51 }
 0x189   : > { %1720 = vpow2.f32 %v1627_v52 }
 0x18a   : > { %1722 = vpow2.f32 %v1628_v53 }
 0x18b   : > { %v965_v54 = vpop.f32.mrf.mxu3  ;;  %v945_v19 = vpop.f32.mrf.mxu2 }
 0x18c   : > { %v971_v56 = vadd.f32 %v965_v54, %v2712_v55  ;;  %v970_v12 = vadd.f32 %v945_v19, %v2713_v8 }
 0x18e   : > { %v1629_v57 = vmul.f32 -1.442695, %v971_v56 }
 0x18f   : > { %v1721_v3 = vpop.eup %1720 }
 0x190   : > { %v1723_v2 = vpop.eup %1722  ;;  %v975_v0 = vadd.f32 1.0, %v1721_v3  ;;  %1724 = vpow2.f32 %v1629_v57 }
 0x191   : > { %v994_v61 = vadd.f32 1.0, %v1723_v2  ;;  %v2717_v2 = vld [vmem:[#allocation51_spill] sm:$0xff] }
 0x192   : > { %1726 = vrcp.f32 %v975_v0  ;;  %v987_v59 = vand.u32 2147483648, %v975_v0  ;;  %v985_v31 = vand.u32 2147483647, %v975_v0  ;;  %vm981_vm3 = vweird.f32 %v975_v0 }
 0x193   : > { %1728 = vrcp.f32 %v994_v61  ;;  %v1006_v6 = vand.u32 2147483648, %v994_v61  ;;  %v1004_v60 = vand.u32 2147483647, %v994_v61  ;;  %vm1000_vm4 = vweird.f32 %v994_v61 }
 0x194   : > { %v988_v5 = vor.u32 1.1754944e-38, %v987_v59  ;;  %vm986_vm7 = vcmp.eq.f32.partialorder %v985_v31, 8.507059e+37 }
 0x195   : > { %v1007_v11 = vor.u32 1.1754944e-38, %v1006_v6  ;;  %vm1005_vm8 = vcmp.eq.f32.partialorder %v1004_v60, 8.507059e+37 }
 0x196   : > { %v1725_v35 = vpop.eup %1724 }
 0x197   : > { %v1014_v34 = vadd.f32 1.0, %v1725_v35 }
 0x198   : > { %v1727_v22 = vpop.eup %1726 }
 0x199   : > { %v1729_v30 = vpop.eup %1728  ;;  %v977_v63 = vmul.f32 %v1727_v22, %v975_v0  ;;  %1730 = vrcp.f32 %v1014_v34  ;;  %vm982_vm15 = vweird.f32 %v1727_v22  ;;  %v1026_v27 = vand.u32 2147483648, %v1014_v34 }
 0x19a   : > { %v996_v7 = vmul.f32 %v1729_v30, %v994_v61  ;;  %1732 = vtanh.f32 %v970_v12  ;;  %vm1001_vm0 = vweird.f32 %v1729_v30  ;;  %vm983_vm5 = vmor %vm981_vm3, %vm982_vm15  ;;  %vm1020_vm10 = vweird.f32 %v1014_v34 }
 0x19b   : > { %v978_v25 = vsub.f32 1.0, %v977_v63  ;;  %vm1002_vm6 = vmor %vm1000_vm4, %vm1001_vm0  ;;  %v1024_v28 = vand.u32 2147483647, %v1014_v34  ;;  %v1027_v32 = vor.u32 1.1754944e-38, %v1026_v27 }
 0x19c   : > { %v997_v38 = vsub.f32 1.0, %v996_v7 }
 0x19d   : > { %v979_v4 = vmul.f32 %v1727_v22, %v978_v25  ;;  %vm1025_vm12 = vcmp.eq.f32.partialorder %v1024_v28, 8.507059e+37 }
 0x19e   : > { %v998_v1 = vmul.f32 %v1729_v30, %v997_v38 }
 0x19f   : > { %v1731_v58 = vpop.eup %1730  ;;  %v980_v9 = vadd.f32 %v1727_v22, %v979_v4 }
 0x1a0   : > { %v999_v62 = vadd.f32 %v1729_v30, %v998_v1  ;;  %v1016_v10 = vmul.f32 %v1731_v58, %v1014_v34  ;;  %v1733_v14 = vpop.eup %1732  ;;  %vm1021_vm9 = vweird.f32 %v1731_v58 }
 0x1a1   : > { %v984_v13 = vsel %vm983_vm5, %v1727_v22, %v980_v9  ;;  %vm1022_vm11 = vmor %vm1020_vm10, %vm1021_vm9 }
 0x1a2   : > { %v989_v15 = vsel %vm986_vm7, %v988_v5, %v984_v13  ;;  %v1003_v16 = vsel %vm1002_vm6, %v1729_v30, %v999_v62  ;;  %v1017_v17 = vsub.f32 1.0, %v1016_v10 }
 0x1a3   : > { %v1008_v18 = vsel %vm1005_vm8, %v1007_v11, %v1003_v16  ;;  %v1031_v20 = vmul.f32 %v1733_v14, %v989_v15 }
 0x1a4   : > { %v1030_v21 = vmul.f32 %v1008_v18, %v2481_v43  ;;  %v1018_v23 = vmul.f32 %v1731_v58, %v1017_v17 }
 0x1a6   : > { %v2553_v24 = vadd.f32 %v1031_v20, %v1030_v21  ;;  %v1019_v26 = vadd.f32 %v1731_v58, %v1018_v23 }
 0x1a8   : > { %1734 = vtanh.f32 %v2553_v24  ;;  %v1023_v29 = vsel %vm1022_vm11, %v1731_v58, %v1019_v26 }
 0x1a9   : > { %v1028_v36 = vsel %vm1025_vm12, %v1027_v32, %v1023_v29  ;;  %v2718_v29 = vld [vmem:[#allocation53_spill] sm:$0xff] }
 0x1ae   : > { %v1735_v33 = vpop.eup %1734 }
 0x1af   : > { %v1034_v37 = vmul.f32 %v1735_v33, %v1028_v36  ;;  %v2719_v33 = vld [vmem:[#allocation54_spill] sm:$0xff] }
 0x1b1   : > { %1056 = vmatmul.f32.vlgmr.msrb.gmra.mxu0 %v1034_v37  ;;  %1076 = vmatmul.f32.vlgmr.msrb.gmra.mxu1 %v1034_v37 }
 0x1b2   : > { %1096 = vmatmul.f32.vlgmr.msrb.gmra.mxu2 %v1034_v37  ;;  %1116 = vmatmul.f32.vlgmr.msrb.gmra.mxu3 %v1034_v37 }
 0x22e   : > { %v1057_v43 = vpop.f32.mrf.mxu0  ;;  %v1077_v39 = vpop.f32.mrf.mxu1 }
 0x22f   : > { %v1120_v41 = vadd.f32 %v1057_v43, %v2714_v40  ;;  %v1121_v44 = vadd.f32 %v1077_v39, %v2715_v42  ;;  %v2720_v40 = vld [vmem:[#allocation56_spill] sm:$0xff] }
 0x231   : > { %v1630_v45 = vmul.f32 -1.442695, %v1120_v41  ;;  %v1631_v46 = vmul.f32 -1.442695, %v1121_v44 }
 0x233   : > { %1736 = vpow2.f32 %v1630_v45 }
 0x234   : > { %1738 = vpow2.f32 %v1631_v46 }
 0x235   : > { %v1117_v47 = vpop.f32.mrf.mxu3  ;;  %v1097_v55 = vpop.f32.mrf.mxu2 }
 0x236   : > { %v1123_v49 = vadd.f32 %v1117_v47, %v2716_v48  ;;  %v1122_v0 = vadd.f32 %v1097_v55, %v2717_v2 }
 0x238   : > { %v1632_v50 = vmul.f32 -1.442695, %v1123_v49 }
 0x239   : > { %v1737_v51 = vpop.eup %1736 }
 0x23a   : > { %v1739_v52 = vpop.eup %1738  ;;  %v1127_v53 = vadd.f32 1.0, %v1737_v51  ;;  %1740 = vpow2.f32 %v1632_v50 }
 0x23b   : > { %v1146_v54 = vadd.f32 1.0, %v1739_v52  ;;  %v2721_v52 = vld [vmem:[#allocation55_spill] sm:$0xff] }
 0x23c   : > { %1742 = vrcp.f32 %v1127_v53  ;;  %v1139_v8 = vand.u32 2147483648, %v1127_v53  ;;  %v1137_v63 = vand.u32 2147483647, %v1127_v53  ;;  %vm1133_vm15 = vweird.f32 %v1127_v53 }
 0x23d   : > { %1744 = vrcp.f32 %v1146_v54  ;;  %v1158_v12 = vand.u32 2147483648, %v1146_v54  ;;  %v1156_v25 = vand.u32 2147483647, %v1146_v54  ;;  %vm1152_vm0 = vweird.f32 %v1146_v54 }
 0x23e   : > { %v1140_v6 = vor.u32 1.1754944e-38, %v1139_v8  ;;  %vm1138_vm5 = vcmp.eq.f32.partialorder %v1137_v63, 8.507059e+37 }
 0x23f   : > { %v1159_v1 = vor.u32 1.1754944e-38, %v1158_v12  ;;  %vm1157_vm6 = vcmp.eq.f32.partialorder %v1156_v25, 8.507059e+37 }
 0x240   : > { %v1741_v56 = vpop.eup %1740 }
 0x241   : > { %v1166_v57 = vadd.f32 1.0, %v1741_v56 }
 0x242   : > { %v1743_v3 = vpop.eup %1742 }
 0x243   : > { %v1745_v61 = vpop.eup %1744  ;;  %v1129_v19 = vmul.f32 %v1743_v3, %v1127_v53  ;;  %1746 = vrcp.f32 %v1166_v57  ;;  %vm1134_vm13 = vweird.f32 %v1743_v3  ;;  %v1178_v17 = vand.u32 2147483648, %v1166_v57 }
 0x244   : > { %v1148_v35 = vmul.f32 %v1745_v61, %v1146_v54  ;;  %1748 = vtanh.f32 %v1122_v0  ;;  %vm1153_vm14 = vweird.f32 %v1745_v61  ;;  %vm1135_vm3 = vmor %vm1133_vm15, %vm1134_vm13  ;;  %vm1172_vm8 = vweird.f32 %v1166_v57 }
 0x245   : > { %v1130_v34 = vsub.f32 1.0, %v1129_v19  ;;  %vm1154_vm4 = vmor %vm1152_vm0, %vm1153_vm14  ;;  %v1176_v18 = vand.u32 2147483647, %v1166_v57  ;;  %v1179_v21 = vor.u32 1.1754944e-38, %v1178_v17 }
 0x246   : > { %v1149_v22 = vsub.f32 1.0, %v1148_v35 }
 0x247   : > { %v1131_v30 = vmul.f32 %v1743_v3, %v1130_v34  ;;  %vm1177_vm10 = vcmp.eq.f32.partialorder %v1176_v18, 8.507059e+37 }
 0x248   : > { %v1150_v7 = vmul.f32 %v1745_v61, %v1149_v22 }
 0x249   : > { %v1747_v38 = vpop.eup %1746  ;;  %v1132_v59 = vadd.f32 %v1743_v3, %v1131_v30 }
 0x24a   : > { %v1151_v4 = vadd.f32 %v1745_v61, %v1150_v7  ;;  %v1168_v31 = vmul.f32 %v1747_v38, %v1166_v57  ;;  %v1749_v58 = vpop.eup %1748  ;;  %vm1173_vm7 = vweird.f32 %v1747_v38 }
 0x24b   : > { %v1136_v60 = vsel %vm1135_vm3, %v1743_v3, %v1132_v59  ;;  %vm1174_vm9 = vmor %vm1172_vm8, %vm1173_vm7 }
 0x24c   : > { %v1141_v9 = vsel %vm1138_vm5, %v1140_v6, %v1136_v60  ;;  %v1155_v5 = vsel %vm1154_vm4, %v1745_v61, %v1151_v4  ;;  %v1169_v62 = vsub.f32 1.0, %v1168_v31 }
 0x24d   : > { %v1160_v10 = vsel %vm1157_vm6, %v1159_v1, %v1155_v5  ;;  %v1183_v11 = vmul.f32 %v1749_v58, %v1141_v9 }
 0x24e   : > { %v1182_v13 = vmul.f32 %v1160_v10, %v2553_v24  ;;  %v1170_v14 = vmul.f32 %v1747_v38, %v1169_v62 }
 0x250   : > { %v2561_v15 = vadd.f32 %v1183_v11, %v1182_v13  ;;  %v1171_v16 = vadd.f32 %v1747_v38, %v1170_v14 }
 0x252   : > { %1750 = vtanh.f32 %v2561_v15  ;;  %v1175_v20 = vsel %vm1174_vm9, %v1747_v38, %v1171_v16 }
 0x253   : > { %v1180_v26 = vsel %vm1177_vm10, %v1179_v21, %v1175_v20 }
 0x258   : > { %v1751_v23 = vpop.eup %1750 }
 0x259   : > { %v1186_v27 = vmul.f32 %v1751_v23, %v1180_v26 }
 0x25b   : > { %1208 = vmatmul.f32.vlgmr.msra.gmra.mxu0 %v1186_v27  ;;  %1228 = vmatmul.f32.vlgmr.msra.gmra.mxu1 %v1186_v27 }
 0x25c   : > { %1248 = vmatmul.f32.vlgmr.msra.gmra.mxu2 %v1186_v27  ;;  %1268 = vmatmul.f32.vlgmr.msra.gmra.mxu3 %v1186_v27 }
 0x2d8   : > { %v1209_v24 = vpop.f32.mrf.mxu0  ;;  %v1229_v28 = vpop.f32.mrf.mxu1 }
 0x2d9   : > { %v1272_v32 = vadd.f32 %v1209_v24, %v2718_v29  ;;  %v1273_v36 = vadd.f32 %v1229_v28, %v2719_v33 }
 0x2db   : > { %v1633_v37 = vmul.f32 -1.442695, %v1272_v32  ;;  %v1634_v43 = vmul.f32 -1.442695, %v1273_v36 }
 0x2dd   : > { %1752 = vpow2.f32 %v1633_v37 }
 0x2de   : > { %1754 = vpow2.f32 %v1634_v43 }
 0x2df   : > { %v1269_v39 = vpop.f32.mrf.mxu3  ;;  %v1249_v48 = vpop.f32.mrf.mxu2 }
 0x2e0   : > { %v1275_v41 = vadd.f32 %v1269_v39, %v2720_v40  ;;  %v1274_v53 = vadd.f32 %v1249_v48, %v2721_v52 }
 0x2e2   : > { %v1635_v42 = vmul.f32 -1.442695, %v1275_v41 }
 0x2e3   : > { %v1753_v44 = vpop.eup %1752 }
 0x2e4   : > { %v1755_v45 = vpop.eup %1754  ;;  %v1279_v46 = vadd.f32 1.0, %v1753_v44  ;;  %1756 = vpow2.f32 %v1635_v42 }
 0x2e5   : > { %v1298_v47 = vadd.f32 1.0, %v1755_v45 }
 0x2e6   : > { %1758 = vrcp.f32 %v1279_v46  ;;  %v1291_v2 = vand.u32 2147483648, %v1279_v46  ;;  %v1289_v19 = vand.u32 2147483647, %v1279_v46  ;;  %vm1285_vm13 = vweird.f32 %v1279_v46 }
 0x2e7   : > { %1760 = vrcp.f32 %v1298_v47  ;;  %v1310_v0 = vand.u32 2147483648, %v1298_v47  ;;  %v1308_v34 = vand.u32 2147483647, %v1298_v47  ;;  %vm1304_vm14 = vweird.f32 %v1298_v47 }
 0x2e8   : > { %v1292_v12 = vor.u32 1.1754944e-38, %v1291_v2  ;;  %vm1290_vm3 = vcmp.eq.f32.partialorder %v1289_v19, 8.507059e+37 }
 0x2e9   : > { %v1311_v7 = vor.u32 1.1754944e-38, %v1310_v0  ;;  %vm1309_vm4 = vcmp.eq.f32.partialorder %v1308_v34, 8.507059e+37 }
 0x2ea   : > { %v1757_v49 = vpop.eup %1756 }
 0x2eb   : > { %v1318_v50 = vadd.f32 1.0, %v1757_v49 }
 0x2ec   : > { %v1759_v51 = vpop.eup %1758 }
 0x2ed   : > { %v1761_v54 = vpop.eup %1760  ;;  %v1281_v55 = vmul.f32 %v1759_v51, %v1279_v46  ;;  %1762 = vrcp.f32 %v1318_v50  ;;  %vm1286_vm11 = vweird.f32 %v1759_v51  ;;  %v1330_v62 = vand.u32 2147483648, %v1318_v50 }
 0x2ee   : > { %v1300_v56 = vmul.f32 %v1761_v54, %v1298_v47  ;;  %1764 = vtanh.f32 %v1274_v53  ;;  %vm1305_vm12 = vweird.f32 %v1761_v54  ;;  %vm1287_vm15 = vmor %vm1285_vm13, %vm1286_vm11  ;;  %vm1324_vm6 = vweird.f32 %v1318_v50 }
 0x2ef   : > { %v1282_v57 = vsub.f32 1.0, %v1281_v55  ;;  %vm1306_vm0 = vmor %vm1304_vm14, %vm1305_vm12  ;;  %v1328_v10 = vand.u32 2147483647, %v1318_v50  ;;  %v1331_v13 = vor.u32 1.1754944e-38, %v1330_v62 }
 0x2f0   : > { %v1301_v3 = vsub.f32 1.0, %v1300_v56 }
 0x2f1   : > { %v1283_v61 = vmul.f32 %v1759_v51, %v1282_v57  ;;  %vm1329_vm8 = vcmp.eq.f32.partialorder %v1328_v10, 8.507059e+37 }
 0x2f2   : > { %v1302_v35 = vmul.f32 %v1761_v54, %v1301_v3 }
 0x2f3   : > { %v1763_v22 = vpop.eup %1762  ;;  %v1284_v8 = vadd.f32 %v1759_v51, %v1283_v61 }
 0x2f4   : > { %v1303_v30 = vadd.f32 %v1761_v54, %v1302_v35  ;;  %v1320_v63 = vmul.f32 %v1763_v22, %v1318_v50  ;;  %v1765_v38 = vpop.eup %1764  ;;  %vm1325_vm5 = vweird.f32 %v1763_v22 }
 0x2f5   : > { %v1288_v25 = vsel %vm1287_vm15, %v1759_v51, %v1284_v8  ;;  %vm1326_vm7 = vmor %vm1324_vm6, %vm1325_vm5 }
 0x2f6   : > { %v1293_v59 = vsel %vm1290_vm3, %v1292_v12, %v1288_v25  ;;  %v1307_v6 = vsel %vm1306_vm0, %v1761_v54, %v1303_v30  ;;  %v1321_v4 = vsub.f32 1.0, %v1320_v63 }
 0x2f7   : > { %v1312_v31 = vsel %vm1309_vm4, %v1311_v7, %v1307_v6  ;;  %v1335_v1 = vmul.f32 %v1765_v38, %v1293_v59 }
 0x2f8   : > { %v1334_v60 = vmul.f32 %v1312_v31, %v2561_v15  ;;  %v1322_v58 = vmul.f32 %v1763_v22, %v1321_v4 }
 0x2fa   : > { %v1336_v9 = vadd.f32 %v1335_v1, %v1334_v60  ;;  %v1323_v5 = vadd.f32 %v1763_v22, %v1322_v58 }
 0x2fc   : > { %1766 = vtanh.f32 %v1336_v9  ;;  %1340 = vst [vmem:[#allocation4] sm:$0xff] %v1336_v9  ;;  %v1327_v11 = vsel %vm1326_vm7, %v1763_v22, %v1323_v5 }
 0x2fd   : > { %v1332_v16 = vsel %vm1329_vm8, %v1331_v13, %v1327_v11 }
 0x301   : > { %1344 = sbr.rel (%p1636_p8) target bundleno = 1304 (0x518), region = 92 }
 0x302   : > { %v1767_v14 = vpop.eup %1766 }
 0x303   : > { %v2569_v17 = vmul.f32 %v1767_v14, %v1332_v16 }
 0x305   : > { %1339 = vst [vmem:[#allocation3] sm:$0xff] %v2569_v17 }
 0x306   : > { %v1347_v15 = vld [vmem:[%s2602_s4] sm:$0xf]  ;;  %v1345_v18 = vld [vmem:[#allocation5] sm:$0xff]  ;;  %v1392_v23 = vld [vmem:[#allocation9 + $0x70] sm:$0xff] }
 0x307   : > { %v1393_v20 = vld [vmem:[#allocation9 + $0x78] sm:$0xff]  ;;  %1637 = vmatpush.msk.msra.mxu0 %vm525_vm1, %v1347_v15  ;;  %v1346_v21 = vmul.f32 0.125, %v1345_v18  ;;  %v1391_v26 = vld [vmem:[#allocation9 + $0x68] sm:$0xff]  ;;  %v1390_v27 = vld [vmem:[#allocation9 + $0x60] sm:$0xff] }
 0x308   : > { %1398 = vmatpush.msra.mxu1 %v1393_v20  ;;  %v1389_v24 = vld [vmem:[#allocation9 + $0x58] sm:$0xff]  ;;  %v1388_v28 = vld [vmem:[#allocation9 + $0x50] sm:$0xff]  ;;  %v1387_v29 = vld [vmem:[#allocation9 + $0x48] sm:$0xff] }
 0x309   : > { %1638 = vmatmul.msk.f32.vlgmr.msra.gmra.mxu0 %vm482_vm2, %v1346_v21  ;;  %v1386_v32 = vld [vmem:[#allocation9 + $0x40] sm:$0xff]  ;;  %v1385_v33 = vld [vmem:[#allocation9 + $0x38] sm:$0xff]  ;;  %v1384_v36 = vld [vmem:[#allocation9 + $0x30] sm:$0xff] }
 0x30a   : > { %1399 = vmatpush.msra.mxu1 %v1392_v23  ;;  %v1383_v37 = vld [vmem:[#allocation9 + $0x28] sm:$0xff]  ;;  %v1382_v43 = vld [vmem:[#allocation9 + $0x20] sm:$0xff]  ;;  %v1381_v39 = vld [vmem:[#allocation9 + $0x18] sm:$0xff] }
 0x30b   : > { %v1380_v40 = vld [vmem:[#allocation9 + $0x10] sm:$0xff]  ;;  %v1379_v41 = vld [vmem:[#allocation9 + $0x8] sm:$0xff]  ;;  %v1378_v42 = vld [vmem:[#allocation9] sm:$0xff] }
 0x30c   : > { %1400 = vmatpush.msra.mxu1 %v1391_v26  ;;  %v1433_v44 = vld [vmem:[#allocation11 + $0x78] sm:$0xff]  ;;  %v1432_v45 = vld [vmem:[#allocation11 + $0x70] sm:$0xff]  ;;  %v1431_v46 = vld [vmem:[#allocation11 + $0x68] sm:$0xff] }
 0x30d   : > { %1438 = vmatpush.msra.mxu2 %v1433_v44  ;;  %v1430_v47 = vld [vmem:[#allocation11 + $0x60] sm:$0xff]  ;;  %v1429_v48 = vld [vmem:[#allocation11 + $0x58] sm:$0xff]  ;;  %v1428_v49 = vld [vmem:[#allocation11 + $0x50] sm:$0xff] }
 0x30e   : > { %1401 = vmatpush.msra.mxu1 %v1390_v27  ;;  %v1427_v50 = vld [vmem:[#allocation11 + $0x48] sm:$0xff]  ;;  %v1426_v51 = vld [vmem:[#allocation11 + $0x40] sm:$0xff]  ;;  %v1425_v52 = vld [vmem:[#allocation11 + $0x38] sm:$0xff] }
 0x30f   : > { %1439 = vmatpush.msra.mxu2 %v1432_v45  ;;  %v1424_v53 = vld [vmem:[#allocation11 + $0x30] sm:$0xff]  ;;  %v1423_v54 = vld [vmem:[#allocation11 + $0x28] sm:$0xff]  ;;  %v1422_v55 = vld [vmem:[#allocation11 + $0x20] sm:$0xff] }
 0x310   : > { %1402 = vmatpush.msra.mxu1 %v1389_v24  ;;  %v1421_v56 = vld [vmem:[#allocation11 + $0x18] sm:$0xff]  ;;  %v1420_v57 = vld [vmem:[#allocation11 + $0x10] sm:$0xff]  ;;  %v1768_v3 = vld [vmem:[%s2603_s5] ss:$0 sm:$0xff] }
 0x311   : > { %1440 = vmatpush.msra.mxu2 %v1431_v46  ;;  %v1419_v61 = vld [vmem:[#allocation11 + $0x8] sm:$0xff]  ;;  %v1418_v19 = vld [vmem:[#allocation11] sm:$0xff]  ;;  %v1474_v35 = vld [vmem:[#allocation12 + $0x78] sm:$0xff] }
 0x312   : > { %1403 = vmatpush.msra.mxu1 %v1388_v28  ;;  %v1473_v34 = vld [vmem:[#allocation12 + $0x70] sm:$0xff]  ;;  %1479 = vmatpush.msra.mxu3 %v1474_v35  ;;  %v1472_v22 = vld [vmem:[#allocation12 + $0x68] sm:$0xff]  ;;  %v1471_v8 = vld [vmem:[#allocation12 + $0x60] sm:$0xff] }
 0x313   : > { %1441 = vmatpush.msra.mxu2 %v1430_v47  ;;  %v1470_v12 = vld [vmem:[#allocation12 + $0x58] sm:$0xff]  ;;  %v1469_v30 = vld [vmem:[#allocation12 + $0x50] sm:$0xff]  ;;  %v1468_v63 = vld [vmem:[#allocation12 + $0x48] sm:$0xff] }
 0x314   : > { %1404 = vmatpush.msra.mxu1 %v1387_v29  ;;  %1480 = vmatpush.msra.mxu3 %v1473_v34  ;;  %v1467_v7 = vld [vmem:[#allocation12 + $0x40] sm:$0xff]  ;;  %v1466_v25 = vld [vmem:[#allocation12 + $0x38] sm:$0xff]  ;;  %v1465_v38 = vld [vmem:[#allocation12 + $0x30] sm:$0xff] }
 0x315   : > { %1442 = vmatpush.msra.mxu2 %v1429_v48  ;;  %v1464_v59 = vld [vmem:[#allocation12 + $0x28] sm:$0xff]  ;;  %v1463_v6 = vld [vmem:[#allocation12 + $0x20] sm:$0xff]  ;;  %v1462_v4 = vld [vmem:[#allocation12 + $0x18] sm:$0xff] }
 0x316   : > { %1405 = vmatpush.msra.mxu1 %v1386_v32  ;;  %1481 = vmatpush.msra.mxu3 %v1472_v22  ;;  %v1769_v31 = vld [vmem:[%s2605_s7] ss:$0 sm:$0xff]  ;;  %v1461_v58 = vld [vmem:[#allocation12 + $0x10] sm:$0xff]  ;;  %v1460_v9 = vld [vmem:[#allocation12 + $0x8] sm:$0xff] }
 0x317   : > { %1443 = vmatpush.msra.mxu2 %v1428_v49  ;;  %v1459_v5 = vld [vmem:[#allocation12] sm:$0xff] }
 0x318   : > { %1406 = vmatpush.msra.mxu1 %v1385_v33  ;;  %1482 = vmatpush.msra.mxu3 %v1471_v8  ;;  %v1770_v62 = vld [vmem:[%s2607_s9] ss:$0 sm:$0xff] }
 0x319   : > { %1444 = vmatpush.msra.mxu2 %v1427_v50  ;;  %v1771_v14 = vld [vmem:[%s2609_s11] ss:$0 sm:$0xff] }
 0x31a   : > { %1407 = vmatpush.msra.mxu1 %v1384_v36  ;;  %1483 = vmatpush.msra.mxu3 %v1470_v12 }
 0x31b   : > { %1445 = vmatpush.msra.mxu2 %v1426_v51 }
 0x31c   : > { %1408 = vmatpush.msra.mxu1 %v1383_v37  ;;  %1484 = vmatpush.msra.mxu3 %v1469_v30 }
 0x31d   : > { %1446 = vmatpush.msra.mxu2 %v1425_v52 }
 0x31e   : > { %1409 = vmatpush.msra.mxu1 %v1382_v43  ;;  %1485 = vmatpush.msra.mxu3 %v1468_v63 }
 0x31f   : > { %1447 = vmatpush.msra.mxu2 %v1424_v53 }
 0x320   : > { %1410 = vmatpush.msra.mxu1 %v1381_v39  ;;  %1486 = vmatpush.msra.mxu3 %v1467_v7 }
 0x321   : > { %1448 = vmatpush.msra.mxu2 %v1423_v54 }
 0x322   : > { %1411 = vmatpush.msra.mxu1 %v1380_v40  ;;  %1487 = vmatpush.msra.mxu3 %v1466_v25 }
 0x323   : > { %1449 = vmatpush.msra.mxu2 %v1422_v55 }
 0x324   : > { %1412 = vmatpush.msra.mxu1 %v1379_v41  ;;  %1488 = vmatpush.msra.mxu3 %v1465_v38 }
 0x325   : > { %1450 = vmatpush.msra.mxu2 %v1421_v56 }
 0x326   : > { %1413 = vmatpush.msra.mxu1 %v1378_v42  ;;  %1489 = vmatpush.msra.mxu3 %v1464_v59 }
 0x327   : > { %1451 = vmatpush.msra.mxu2 %v1420_v57 }
 0x328   : > { %1490 = vmatpush.msra.mxu3 %v1463_v6 }
 0x329   : > { %1452 = vmatpush.msra.mxu2 %v1419_v61 }
 0x32a   : > { %1491 = vmatpush.msra.mxu3 %v1462_v4 }
 0x32b   : > { %1453 = vmatpush.msra.mxu2 %v1418_v19 }
 0x32c   : > { %1492 = vmatpush.msra.mxu3 %v1461_v58 }
 0x32e   : > { %1493 = vmatpush.msra.mxu3 %v1460_v9 }
 0x330   : > { %1494 = vmatpush.msra.mxu3 %v1459_v5 }
 0x386   : > { %v1375_v2 = vpop.f32.mrf.mxu0 }
 0x387   : > { %v1376_v0 = vadd.f32 %v1768_v3, %v1375_v2 }
 0x389   : > { %1414 = vmatmul.f32.vlgmr.msra.gmra.mxu1 %v1376_v0 }
 0x406   : > { %v1415_v1 = vpop.f32.mrf.mxu1 }
 0x407   : > { %v1416_v60 = vadd.f32 %v1769_v31, %v1415_v1 }
 0x409   : > { %1454 = vmatmul.f32.vlgmr.msra.gmra.mxu2 %v1416_v60 }
 0x48c   : > { %v1455_v10 = vpop.f32.mrf.mxu2 }
 0x48d   : > { %v1456_v11 = vadd.f32 %v1770_v62, %v1455_v10 }
 0x48f   : > { %v1458_v13 = vadd.f32 %v1456_v11, %v2569_v17 }
 0x491   : > { %1495 = vmatmul.f32.vlgmr.msra.gmra.mxu3 %v1458_v13 }
 0x514   : > { %v1496_v16 = vpop.f32.mrf.mxu3 }
 0x515   : > { %v1497_v15 = vadd.f32 %v1771_v14, %v1496_v16 }
 0x517   : > { %1499 = vst [vmem:[#allocation14] sm:$0xff] %v1497_v15 }
 0x518 PF: > { %p1684_p9 = scmp.eq.s32.totalorder %s2028_s25, 1  ;;  %s1953_s13 = smov [#allocation14]  }
 0x519   : > { %s1506_s14 = sshll.u32 %s1953_s13, 4  ;;  %s1508_s18 = sshll.u32 %s2610_s12, 4  ;;  %s1507_s14 = int_to_ptr.vmem [resolvable:$true] %s1506_s14  ;;  %s1509_s18 = int_to_ptr.hbm [resolvable:$true] %s1508_s18 }
 0x51a   : > { %1660 = dma.vmem_to_hbm [thread:$0]  (%p1684_p9), %s1507_s14, 128, %s1509_s18, [#allocation8]  }
 0x51b   : > { %1937 = dma.done.wait (%p1684_p9), [#allocation8], 128  }
 0x51c   : > { %1939 = vsyncadd (%p1684_p9), [#allocation8], 4294967168 }
 0x51d PF: > { %s26_s21 = sadd.s32 1, %s1942_s21  }
 0x51e   : > { %p23_p10 = scmp.ge.s32.totalorder %s26_s21, 4  }
 0x520   :  { %25 = sbr.rel (!%p23_p10) target bundleno = 7 (0x7), region = 124 }
 0x525   :  { %1522 = vsyncpa [#allocation7], 1 }
 0x526   :  { %1524 = vsyncpa [#allocation7 + $0x1], 1 }
 0x527   :  { %1525 = vsyncpa [#allocation10], 1 }
 0x528   :  { %1526 = vsyncpa [#allocation13], 1 }
 0x529   :  { %1527 = vsyncpa [#allocation8], 1 }
 0x52a   :  { %1529 = vsyncpa [#allocation8 + $0x1], 1 }

</bundles_post_ra>
